<compile_context>
chip_gen: v6e
topology: v6e:2x2x1
jax: 0.10.0
libtpu: 0.0.40
codegen_flags: <defaults>
</compile_context>

<pallas_src>
import math
from functools import partial

import jax
import jax.numpy as jnp
from jax.experimental import pallas as pl
from jax.experimental.pallas import tpu as pltpu

H1, H2 = 400, 300      # logical hidden sizes (as in the PyTorch module)
H1P, H2P = 512, 384    # lane-padded hidden sizes (multiples of 128)


def _round_up(x: int, m: int) -> int:
    return (x + m - 1) // m * m


def _actor_kernel(x_ref, w1_ref, b1_ref, w2_ref, b2_ref, w3_ref, b3_ref, o_ref,
                  *, max_action: float):
    # Layer 1: [TB, S](bf16) @ [S, 512](bf16) -> f32 acc, + bias, relu
    h1 = jnp.dot(x_ref[...], w1_ref[...], preferred_element_type=jnp.float32)
    h1 = jnp.maximum(h1 + b1_ref[...], 0.0)
    # Layer 2: [TB, 512] @ [512, 384]
    h2 = jnp.dot(h1.astype(jnp.bfloat16), w2_ref[...],
                 preferred_element_type=jnp.float32)
    h2 = jnp.maximum(h2 + b2_ref[...], 0.0)
    # Layer 3: [TB, 384] @ [384, AP]  -> max_action * tanh (EUP)
    h3 = jnp.dot(h2.astype(jnp.bfloat16), w3_ref[...],
                 preferred_element_type=jnp.float32)
    o_ref[...] = (max_action * jnp.tanh(h3 + b3_ref[...])).astype(o_ref.dtype)


def _batch_tiling(B: int):
    """Pick (TB, B_pad).  Small batch -> one small tile (latency path).
    Larger batch -> >=2 tiles (v7x megacore), tiles up to 1024 rows."""
    b8 = _round_up(max(B, 8), 8)
    if b8 <= 256:
        tb = b8
    else:
        tb = min(1024, _round_up(pl.cdiv(b8, 2), 8))
    b_pad = _round_up(b8, tb)
    return tb, b_pad


def _in_specs(S: int, TB: int, AP: int, single_buffer_weights: bool):
    def const(shape):
        idx = lambda i: (0,) * len(shape)
        if single_buffer_weights:
            # Constant index_map -> no point double-buffering; saves VMEM + DMA
            # bookkeeping per grid step.
            return pl.BlockSpec(shape, idx, pipeline_mode=pl.Buffered(1))
        return pl.BlockSpec(shape, idx)

    return [
        pl.BlockSpec((TB, S), lambda i: (i, 0)),   # activations: tiled over batch
        const((S, H1P)), const((1, H1P)),          # weights/biases: VMEM-resident
        const((H1P, H2P)), const((1, H2P)),
        const((H2P, AP)), const((1, AP)),
    ]


def actor_forward(state, params, max_action: float, action_dim: int):
    """Fused Actor MLP.

    state:  [B, state_dim] float32
    params: dict with bf16 weights w1 [S,512], w2 [512,384], w3 [384,AP]
            (zero-padded past the logical sizes) and f32 biases b1/b2/b3 [1,*].
    Returns [B, action_dim] float32.
    """
    B, S = state.shape
    AP = params["w3"].shape[1]

    TB, B_pad = _batch_tiling(B)
    x = state.astype(jnp.bfloat16)
    if B_pad != B:
        x = jnp.pad(x, ((0, B_pad - B), (0, 0)))

    kernel = partial(_actor_kernel, max_action=float(max_action))

    def run(single_buffer_weights: bool):
        return pl.pallas_call(
            kernel,
            out_shape=jax.ShapeDtypeStruct((B_pad, AP), jnp.bfloat16),
            grid=(B_pad // TB,),
            in_specs=_in_specs(S, TB, AP, single_buffer_weights),
            out_specs=pl.BlockSpec((TB, AP), lambda i: (i, 0)),
            compiler_params=pltpu.CompilerParams(
                dimension_semantics=("parallel",),
            ),
        )(x, params["w1"], params["b1"], params["w2"], params["b2"],
          params["w3"], params["b3"])

    try:
        out = run(True)
    except Exception:
        # pipeline_mode=pl.Buffered(1) unsupported on this build -> default buffering.
        out = run(False)

    return out[:B, :action_dim].astype(jnp.float32)


def init_actor_params(key, state_dim: int, action_dim: int):
    """nn.Linear-style init U(-1/sqrt(fan_in), +1/sqrt(fan_in)).

    Weights stored as [in, out] (transposed vs. PyTorch), zero-padded to lane
    multiples on the output dims, and cast to bf16. Biases kept f32 [1, out_pad].
    """
    AP = _round_up(max(action_dim, 1), 128)
    dims = [
        (state_dim, H1, state_dim, H1P),
        (H1, H2, H1P, H2P),
        (H2, action_dim, H2P, AP),
    ]
    params = {}
    for i, (fan_in, fan_out, in_pad, out_pad) in enumerate(dims, start=1):
        key, kw, kb = jax.random.split(key, 3)
        bound = 1.0 / math.sqrt(fan_in)
        w = jax.random.uniform(kw, (fan_in, fan_out), jnp.float32,
                               minval=-bound, maxval=bound)
        b = jax.random.uniform(kb, (fan_out,), jnp.float32,
                               minval=-bound, maxval=bound)
        w_pad = jnp.zeros((in_pad, out_pad), jnp.float32).at[:fan_in, :fan_out].set(w)
        b_pad = jnp.zeros((1, out_pad), jnp.float32).at[0, :fan_out].set(b)
        params[f"w{i}"] = w_pad.astype(jnp.bfloat16)
        params[f"b{i}"] = b_pad
    return params


def actor_reference(state, params, max_action: float, action_dim: int):
    """Pure-JAX reference mimicking the kernel's bf16 weight / f32 accum math."""
    f32 = jnp.float32
    bf16 = jnp.bfloat16
    w1 = params["w1"].astype(f32)
    w2 = params["w2"].astype(f32)
    w3 = params["w3"].astype(f32)
    x = state.astype(bf16).astype(f32)
    h = jnp.maximum(x @ w1 + params["b1"], 0.0)
    h = jnp.maximum(h.astype(bf16).astype(f32) @ w2 + params["b2"], 0.0)
    out = max_action * jnp.tanh(h.astype(bf16).astype(f32) @ w3 + params["b3"])
    out = out.astype(bf16).astype(f32)   # kernel writes the output tile in bf16
    return out[:, :action_dim]


if __name__ == "__main__":
    state_dim = 16
    action_dim = 8
    max_action = 2.0

    key = jax.random.PRNGKey(0)
    key_params, key_s1, key_s2 = jax.random.split(key, 3)
    params = init_actor_params(key_params, state_dim, action_dim)

    # Small-batch (latency) path: single tile.
    state_small = jax.random.normal(key_s1, (2, state_dim), dtype=jnp.float32)
    out_small = jax.block_until_ready(
        actor_forward(state_small, params, max_action, action_dim))
    ref_small = actor_reference(state_small, params, max_action, action_dim)
    assert out_small.shape == (2, action_dim)
    assert jnp.allclose(out_small, ref_small, atol=2e-2, rtol=2e-2), \
        "small-batch mismatch vs. reference"

    # Larger batch: exercises the multi-tile (>=2 grid steps) parallel path.
    state_big = jax.random.normal(key_s2, (384, state_dim), dtype=jnp.float32)
    out_big = jax.block_until_ready(
        actor_forward(state_big, params, max_action, action_dim))
    ref_big = actor_reference(state_big, params, max_action, action_dim)
    assert out_big.shape == (384, action_dim)
    assert jnp.allclose(out_big, ref_big, atol=2e-2, rtol=2e-2), \
        "multi-tile mismatch vs. reference"

    print("KERNEL_OK")
</pallas_src>

<mosaic_0001>
module attributes {stable_mosaic.version = 11 : i64} {
  func.func @_actor_kernel(%arg0: i32, %arg1: memref<8x16xbf16, #tpu.memory_space<vmem>>, %arg2: memref<16x512xbf16, #tpu.memory_space<vmem>>, %arg3: memref<1x512xf32, #tpu.memory_space<vmem>>, %arg4: memref<512x384xbf16, #tpu.memory_space<vmem>>, %arg5: memref<1x384xf32, #tpu.memory_space<vmem>>, %arg6: memref<384x128xbf16, #tpu.memory_space<vmem>>, %arg7: memref<1x128xf32, #tpu.memory_space<vmem>>, %arg8: memref<8x128xbf16, #tpu.memory_space<vmem>>) attributes {dimension_semantics = [#tpu.dimension_semantics<parallel>], iteration_bounds = array<i64: 1>, scalar_prefetch = 0 : i64, scratch_operands = 0 : i64, tpu.core_type = #tpu.core_type<tc>, window_params = [{transform_indices = @transform_0, window_bounds = array<i64: 8, 16>}, {pipeline_mode = #tpu.pipeline_mode<synchronous>, transform_indices = @transform_1, window_bounds = array<i64: 16, 512>}, {pipeline_mode = #tpu.pipeline_mode<synchronous>, transform_indices = @transform_2, window_bounds = array<i64: 1, 512>}, {pipeline_mode = #tpu.pipeline_mode<synchronous>, transform_indices = @transform_3, window_bounds = array<i64: 512, 384>}, {pipeline_mode = #tpu.pipeline_mode<synchronous>, transform_indices = @transform_4, window_bounds = array<i64: 1, 384>}, {pipeline_mode = #tpu.pipeline_mode<synchronous>, transform_indices = @transform_5, window_bounds = array<i64: 384, 128>}, {pipeline_mode = #tpu.pipeline_mode<synchronous>, transform_indices = @transform_6, window_bounds = array<i64: 1, 128>}, {transform_indices = @transform_7, window_bounds = array<i64: 8, 128>}]} {
    %c0 = arith.constant 0 : index
    %c0_0 = arith.constant 0 : index
    %0 = vector.load %arg1[%c0, %c0_0] : memref<8x16xbf16, #tpu.memory_space<vmem>>, vector<8x16xbf16>
    %c0_1 = arith.constant 0 : index
    %c0_2 = arith.constant 0 : index
    %1 = vector.load %arg2[%c0_1, %c0_2] : memref<16x512xbf16, #tpu.memory_space<vmem>>, vector<16x512xbf16>
    %cst = arith.constant dense<0.000000e+00> : vector<8x512xf32>
    %2 = tpu.matmul %0, %1, %cst {dimension_numbers = #tpu.dot_dimension_numbers<[1], [0], [0], [1], [0, 0, 1, 1], [], []>} : vector<8x16xbf16>, vector<16x512xbf16>, vector<8x512xf32> -> vector<8x512xf32>
    %c0_3 = arith.constant 0 : index
    %c0_4 = arith.constant 0 : index
    %3 = vector.load %arg3[%c0_3, %c0_4] : memref<1x512xf32, #tpu.memory_space<vmem>>, vector<1x512xf32>
    %4 = vector.broadcast %3 : vector<1x512xf32> to vector<8x512xf32>
    %5 = arith.addf %2, %4 : vector<8x512xf32>
    %cst_5 = arith.constant 0.000000e+00 : f32
    %6 = vector.broadcast %cst_5 : f32 to vector<8x512xf32>
    %7 = arith.maximumf %5, %6 : vector<8x512xf32>
    %8 = arith.truncf %7 : vector<8x512xf32> to vector<8x512xbf16>
    %c0_6 = arith.constant 0 : index
    %c0_7 = arith.constant 0 : index
    %9 = vector.load %arg4[%c0_6, %c0_7] : memref<512x384xbf16, #tpu.memory_space<vmem>>, vector<512x384xbf16>
    %cst_8 = arith.constant dense<0.000000e+00> : vector<8x384xf32>
    %10 = tpu.matmul %8, %9, %cst_8 {dimension_numbers = #tpu.dot_dimension_numbers<[1], [0], [0], [1], [0, 0, 1, 1], [], []>} : vector<8x512xbf16>, vector<512x384xbf16>, vector<8x384xf32> -> vector<8x384xf32>
    %c0_9 = arith.constant 0 : index
    %c0_10 = arith.constant 0 : index
    %11 = vector.load %arg5[%c0_9, %c0_10] : memref<1x384xf32, #tpu.memory_space<vmem>>, vector<1x384xf32>
    %12 = vector.broadcast %11 : vector<1x384xf32> to vector<8x384xf32>
    %13 = arith.addf %10, %12 : vector<8x384xf32>
    %cst_11 = arith.constant 0.000000e+00 : f32
    %14 = vector.broadcast %cst_11 : f32 to vector<8x384xf32>
    %15 = arith.maximumf %13, %14 : vector<8x384xf32>
    %16 = arith.truncf %15 : vector<8x384xf32> to vector<8x384xbf16>
    %c0_12 = arith.constant 0 : index
    %c0_13 = arith.constant 0 : index
    %17 = vector.load %arg6[%c0_12, %c0_13] : memref<384x128xbf16, #tpu.memory_space<vmem>>, vector<384x128xbf16>
    %cst_14 = arith.constant dense<0.000000e+00> : vector<8x128xf32>
    %18 = tpu.matmul %16, %17, %cst_14 {dimension_numbers = #tpu.dot_dimension_numbers<[1], [0], [0], [1], [0, 0, 1, 1], [], []>} : vector<8x384xbf16>, vector<384x128xbf16>, vector<8x128xf32> -> vector<8x128xf32>
    %c0_15 = arith.constant 0 : index
    %c0_16 = arith.constant 0 : index
    %19 = vector.load %arg7[%c0_15, %c0_16] : memref<1x128xf32, #tpu.memory_space<vmem>>, vector<1x128xf32>
    %20 = vector.broadcast %19 : vector<1x128xf32> to vector<8x128xf32>
    %21 = arith.addf %18, %20 : vector<8x128xf32>
    %22 = math.tanh %21 : vector<8x128xf32>
    %cst_17 = arith.constant 2.000000e+00 : f32
    %23 = vector.broadcast %cst_17 : f32 to vector<8x128xf32>
    %24 = arith.mulf %23, %22 : vector<8x128xf32>
    %25 = arith.truncf %24 : vector<8x128xf32> to vector<8x128xbf16>
    %c0_18 = arith.constant 0 : index
    %c0_19 = arith.constant 0 : index
    %26 = vector.load %arg8[%c0_18, %c0_19] : memref<8x128xbf16, #tpu.memory_space<vmem>>, vector<8x128xbf16>
    tpu.vector_store %arg8[%c0_18, %c0_19], %25 {strides = array<i32>} : memref<8x128xbf16, #tpu.memory_space<vmem>>, vector<8x128xbf16>,
    return
  }
  func.func @transform_0(%arg0: i32) -> (i32, i32) {
    %c0_i32 = arith.constant 0 : i32
    %c0_i32_0 = arith.constant 0 : i32
    return %arg0, %c0_i32 : i32, i32
  }
  func.func @transform_1(%arg0: i32) -> (i32, i32) {
    %c0_i32 = arith.constant 0 : i32
    %c0_i32_0 = arith.constant 0 : i32
    %c0_i32_1 = arith.constant 0 : i32
    return %c0_i32, %c0_i32_0 : i32, i32
  }
  func.func @transform_2(%arg0: i32) -> (i32, i32) {
    %c0_i32 = arith.constant 0 : i32
    %c0_i32_0 = arith.constant 0 : i32
    %c0_i32_1 = arith.constant 0 : i32
    return %c0_i32, %c0_i32_0 : i32, i32
  }
  func.func @transform_3(%arg0: i32) -> (i32, i32) {
    %c0_i32 = arith.constant 0 : i32
    %c0_i32_0 = arith.constant 0 : i32
    %c0_i32_1 = arith.constant 0 : i32
    return %c0_i32, %c0_i32_0 : i32, i32
  }
  func.func @transform_4(%arg0: i32) -> (i32, i32) {
    %c0_i32 = arith.constant 0 : i32
    %c0_i32_0 = arith.constant 0 : i32
    %c0_i32_1 = arith.constant 0 : i32
    return %c0_i32, %c0_i32_0 : i32, i32
  }
  func.func @transform_5(%arg0: i32) -> (i32, i32) {
    %c0_i32 = arith.constant 0 : i32
    %c0_i32_0 = arith.constant 0 : i32
    %c0_i32_1 = arith.constant 0 : i32
    return %c0_i32, %c0_i32_0 : i32, i32
  }
  func.func @transform_6(%arg0: i32) -> (i32, i32) {
    %c0_i32 = arith.constant 0 : i32
    %c0_i32_0 = arith.constant 0 : i32
    %c0_i32_1 = arith.constant 0 : i32
    return %c0_i32, %c0_i32_0 : i32, i32
  }
  func.func @transform_7(%arg0: i32) -> (i32, i32) {
    %c0_i32 = arith.constant 0 : i32
    %c0_i32_0 = arith.constant 0 : i32
    return %arg0, %c0_i32 : i32, i32
  }
}

module attributes {stable_mosaic.version = 11 : i64} {
  func.func @_actor_kernel(%arg0: i32, %arg1: memref<8x16xbf16, #tpu.memory_space<vmem>>, %arg2: memref<16x512xbf16, #tpu.memory_space<vmem>>, %arg3: memref<1x512xf32, #tpu.memory_space<vmem>>, %arg4: memref<512x384xbf16, #tpu.memory_space<vmem>>, %arg5: memref<1x384xf32, #tpu.memory_space<vmem>>, %arg6: memref<384x128xbf16, #tpu.memory_space<vmem>>, %arg7: memref<1x128xf32, #tpu.memory_space<vmem>>, %arg8: memref<8x128xbf16, #tpu.memory_space<vmem>>) attributes {dimension_semantics = [#tpu.dimension_semantics<parallel>], iteration_bounds = array<i64: 1>, scalar_prefetch = 0 : i64, scratch_operands = 0 : i64, tpu.core_type = #tpu.core_type<tc>, window_params = [{transform_indices = @transform_0, window_bounds = array<i64: 8, 16>}, {pipeline_mode = #tpu.pipeline_mode<synchronous>, transform_indices = @transform_1, window_bounds = array<i64: 16, 512>}, {pipeline_mode = #tpu.pipeline_mode<synchronous>, transform_indices = @transform_2, window_bounds = array<i64: 1, 512>}, {pipeline_mode = #tpu.pipeline_mode<synchronous>, transform_indices = @transform_3, window_bounds = array<i64: 512, 384>}, {pipeline_mode = #tpu.pipeline_mode<synchronous>, transform_indices = @transform_4, window_bounds = array<i64: 1, 384>}, {pipeline_mode = #tpu.pipeline_mode<synchronous>, transform_indices = @transform_5, window_bounds = array<i64: 384, 128>}, {pipeline_mode = #tpu.pipeline_mode<synchronous>, transform_indices = @transform_6, window_bounds = array<i64: 1, 128>}, {transform_indices = @transform_7, window_bounds = array<i64: 8, 128>}]} {
    %c0 = arith.constant 0 : index
    %c0_0 = arith.constant 0 : index
    %0 = vector.load %arg1[%c0, %c0_0] : memref<8x16xbf16, #tpu.memory_space<vmem>>, vector<8x16xbf16>
    %c0_1 = arith.constant 0 : index
    %c0_2 = arith.constant 0 : index
    %1 = vector.load %arg2[%c0_1, %c0_2] : memref<16x512xbf16, #tpu.memory_space<vmem>>, vector<16x512xbf16>
    %cst = arith.constant dense<0.000000e+00> : vector<8x512xf32>
    %2 = tpu.matmul %0, %1, %cst {dimension_numbers = #tpu.dot_dimension_numbers<[1], [0], [0], [1], [0, 0, 1, 1], [], []>} : vector<8x16xbf16>, vector<16x512xbf16>, vector<8x512xf32> -> vector<8x512xf32>
    %c0_3 = arith.constant 0 : index
    %c0_4 = arith.constant 0 : index
    %3 = vector.load %arg3[%c0_3, %c0_4] : memref<1x512xf32, #tpu.memory_space<vmem>>, vector<1x512xf32>
    %4 = vector.broadcast %3 : vector<1x512xf32> to vector<8x512xf32>
    %5 = arith.addf %2, %4 : vector<8x512xf32>
    %cst_5 = arith.constant 0.000000e+00 : f32
    %6 = vector.broadcast %cst_5 : f32 to vector<8x512xf32>
    %7 = arith.maximumf %5, %6 : vector<8x512xf32>
    %8 = arith.truncf %7 : vector<8x512xf32> to vector<8x512xbf16>
    %c0_6 = arith.constant 0 : index
    %c0_7 = arith.constant 0 : index
    %9 = vector.load %arg4[%c0_6, %c0_7] : memref<512x384xbf16, #tpu.memory_space<vmem>>, vector<512x384xbf16>
    %cst_8 = arith.constant dense<0.000000e+00> : vector<8x384xf32>
    %10 = tpu.matmul %8, %9, %cst_8 {dimension_numbers = #tpu.dot_dimension_numbers<[1], [0], [0], [1], [0, 0, 1, 1], [], []>} : vector<8x512xbf16>, vector<512x384xbf16>, vector<8x384xf32> -> vector<8x384xf32>
    %c0_9 = arith.constant 0 : index
    %c0_10 = arith.constant 0 : index
    %11 = vector.load %arg5[%c0_9, %c0_10] : memref<1x384xf32, #tpu.memory_space<vmem>>, vector<1x384xf32>
    %12 = vector.broadcast %11 : vector<1x384xf32> to vector<8x384xf32>
    %13 = arith.addf %10, %12 : vector<8x384xf32>
    %cst_11 = arith.constant 0.000000e+00 : f32
    %14 = vector.broadcast %cst_11 : f32 to vector<8x384xf32>
    %15 = arith.maximumf %13, %14 : vector<8x384xf32>
    %16 = arith.truncf %15 : vector<8x384xf32> to vector<8x384xbf16>
    %c0_12 = arith.constant 0 : index
    %c0_13 = arith.constant 0 : index
    %17 = vector.load %arg6[%c0_12, %c0_13] : memref<384x128xbf16, #tpu.memory_space<vmem>>, vector<384x128xbf16>
    %cst_14 = arith.constant dense<0.000000e+00> : vector<8x128xf32>
    %18 = tpu.matmul %16, %17, %cst_14 {dimension_numbers = #tpu.dot_dimension_numbers<[1], [0], [0], [1], [0, 0, 1, 1], [], []>} : vector<8x384xbf16>, vector<384x128xbf16>, vector<8x128xf32> -> vector<8x128xf32>
    %c0_15 = arith.constant 0 : index
    %c0_16 = arith.constant 0 : index
    %19 = vector.load %arg7[%c0_15, %c0_16] : memref<1x128xf32, #tpu.memory_space<vmem>>, vector<1x128xf32>
    %20 = vector.broadcast %19 : vector<1x128xf32> to vector<8x128xf32>
    %21 = arith.addf %18, %20 : vector<8x128xf32>
    %22 = math.tanh %21 : vector<8x128xf32>
    %cst_17 = arith.constant 2.000000e+00 : f32
    %23 = vector.broadcast %cst_17 : f32 to vector<8x128xf32>
    %24 = arith.mulf %23, %22 : vector<8x128xf32>
    %25 = arith.truncf %24 : vector<8x128xf32> to vector<8x128xbf16>
    %c0_18 = arith.constant 0 : index
    %c0_19 = arith.constant 0 : index
    %26 = vector.load %arg8[%c0_18, %c0_19] : memref<8x128xbf16, #tpu.memory_space<vmem>>, vector<8x128xbf16>
    tpu.vector_store %arg8[%c0_18, %c0_19], %25 {strides = array<i32>} : memref<8x128xbf16, #tpu.memory_space<vmem>>, vector<8x128xbf16>,
    return
  }
  func.func @transform_0(%arg0: i32) -> (i32, i32) {
    %c0_i32 = arith.constant 0 : i32
    %c0_i32_0 = arith.constant 0 : i32
    return %arg0, %c0_i32 : i32, i32
  }
  func.func @transform_1(%arg0: i32) -> (i32, i32) {
    %c0_i32 = arith.constant 0 : i32
    %c0_i32_0 = arith.constant 0 : i32
    %c0_i32_1 = arith.constant 0 : i32
    return %c0_i32, %c0_i32_0 : i32, i32
  }
  func.func @transform_2(%arg0: i32) -> (i32, i32) {
    %c0_i32 = arith.constant 0 : i32
    %c0_i32_0 = arith.constant 0 : i32
    %c0_i32_1 = arith.constant 0 : i32
    return %c0_i32, %c0_i32_0 : i32, i32
  }
  func.func @transform_3(%arg0: i32) -> (i32, i32) {
    %c0_i32 = arith.constant 0 : i32
    %c0_i32_0 = arith.constant 0 : i32
    %c0_i32_1 = arith.constant 0 : i32
    return %c0_i32, %c0_i32_0 : i32, i32
  }
  func.func @transform_4(%arg0: i32) -> (i32, i32) {
    %c0_i32 = arith.constant 0 : i32
    %c0_i32_0 = arith.constant 0 : i32
    %c0_i32_1 = arith.constant 0 : i32
    return %c0_i32, %c0_i32_0 : i32, i32
  }
  func.func @transform_5(%arg0: i32) -> (i32, i32) {
    %c0_i32 = arith.constant 0 : i32
    %c0_i32_0 = arith.constant 0 : i32
    %c0_i32_1 = arith.constant 0 : i32
    return %c0_i32, %c0_i32_0 : i32, i32
  }
  func.func @transform_6(%arg0: i32) -> (i32, i32) {
    %c0_i32 = arith.constant 0 : i32
    %c0_i32_0 = arith.constant 0 : i32
    %c0_i32_1 = arith.constant 0 : i32
    return %c0_i32, %c0_i32_0 : i32, i32
  }
  func.func @transform_7(%arg0: i32) -> (i32, i32) {
    %c0_i32 = arith.constant 0 : i32
    %c0_i32_0 = arith.constant 0 : i32
    return %arg0, %c0_i32 : i32, i32
  }
}

</mosaic_0001>

<bundles_post_ra>
// kernel: tpu_custom_call.1
= control target key start
LH: loop header
LB: loop body
LE: loop exit
PB: predicated region body
PF: predicated region fallthrough
CT: control target
= control target key end

     0   :  { %12 = vsyncpa [#allocation3], 0  ;;  %s1988_s0 = inlined_call_operand.hbm [shape: bf16[8,16], index: 0, kind: input, shape index: {}]   ;;  %s1989_s1 = inlined_call_operand.hbm [shape: bf16[16,512], index: 1, kind: input, shape index: {}]   ;;  %s1990_s2 = inlined_call_operand.hbm [shape: f32[1,512], index: 2, kind: input, shape index: {}]   ;;  %s1991_s3 = inlined_call_operand.hbm [shape: bf16[512,384], index: 3, kind: input, shape index: {}]   ;;  %s1992_s4 = inlined_call_operand.vmem [shape: f32[1,384], index: 4, kind: input, shape index: {}]   ;;  %s1993_s5 = inlined_call_operand.hbm [shape: bf16[384,128], index: 5, kind: input, shape index: {}]   ;;  %s1994_s6 = inlined_call_operand.vmem [shape: f32[1,128], index: 6, kind: input, shape index: {}]   ;;  %s1995_s7 = inlined_call_operand.hbm [shape: bf16[8,128], index: 7, kind: output, shape index: {}]  }
   0x1   :  { %13 = vsyncpa [#allocation6], 0 }
   0x2   :  { %14 = vsyncpa [#allocation9], 0 }
   0x3   :  { %15 = vsyncpa [#allocation4], 0  ;;  %s1883_s24 = smov [#allocation5]  }
   0x4   :  { %s31_s25 = sshll.u32 %s1883_s24, 4  ;;  %s32_s25 = int_to_ptr.vmem [resolvable:$true] %s31_s25 }
   0x5   :  { %s1763_s26 = scalar_lea.vmem %s32_s25, 512  ;;  %p1768_p1 = scmp.lt.s32.totalorder %s32_s25, %s32_s25 }
   0x6   :  { %p1764_p0 = scmp.ne.s32.totalorder %s32_s25, %s1763_s26  ;;  %p1769_p2 = scmp.lt.s32.totalorder %s1763_s26, %s1763_s26 }
   0x8   :  { %p1770_p3 = por %p1769_p2, %p1768_p1 }
   0xa   :  { %p1771_p4 = pnand %p1770_p3, %p1764_p0 }
   0xc   :  { %1774 = shalt.err (!%p1771_p4)
}
   0xd   :  { %s1884_s27 = smov 256   ;;  %s1885_s28 = smov 16  }
   0xe   :  { %37 = dma.hbm_to_vmem [thread:$0]  %s1989_s1, 512, %s32_s25, [#allocation6], %s1884_s27, %s1884_s27, %s1885_s28  }
   0xf   :  { %s1886_s8 = smov [#allocation8]  }
  0x10   :  { %s53_s9 = sshll.u32 %s1886_s8, 4  ;;  %s54_s9 = int_to_ptr.vmem [resolvable:$true] %s53_s9 }
  0x11   :  { %s1783_s10 = scalar_lea.vmem %s54_s9, 12288  ;;  %p1788_p6 = scmp.lt.s32.totalorder %s54_s9, %s54_s9 }
  0x12   :  { %p1784_p5 = scmp.ne.s32.totalorder %s54_s9, %s1783_s10  ;;  %p1789_p7 = scmp.lt.s32.totalorder %s1783_s10, %s1783_s10 }
  0x14   :  { %p1790_p8 = por %p1789_p7, %p1788_p6 }
  0x16   :  { %p1791_p9 = pnand %p1790_p8, %p1784_p5 }
  0x18   :  { %1794 = shalt.err (!%p1791_p9)
}
  0x19   :  { %s1887_s11 = smov 192   ;;  %s1888_s12 = smov 12  }
  0x1a   :  { %59 = dma.hbm_to_vmem [thread:$0]  %s1991_s3, 12288, %s54_s9, [#allocation9], %s1887_s11, %s1887_s11, %s1888_s12  }
  0x1b   :  { %s1889_s15 = smov [#allocation2]   ;;  %s1890_s17 = smov [#allocation7]  }
  0x1c   :  { %s22_s16 = sshll.u32 %s1889_s15, 4  ;;  %s44_s1 = sshll.u32 %s1890_s17, 4  ;;  %s23_s16 = int_to_ptr.vmem [resolvable:$true] %s22_s16  ;;  %s45_s1 = int_to_ptr.vmem [resolvable:$true] %s44_s1 }
  0x1d   :  { %s1803_s18 = scalar_lea.vmem %s23_s16, 64  ;;  %p1808_p11 = scmp.lt.s32.totalorder %s23_s16, %s23_s16 }
  0x1e   :  { %p1804_p10 = scmp.ne.s32.totalorder %s23_s16, %s1803_s18  ;;  %p1809_p12 = scmp.lt.s32.totalorder %s1803_s18, %s1803_s18 }
  0x20   :  { %p1810_p13 = por %p1809_p12, %p1808_p11 }
  0x22   :  { %p1811_p0 = pnand %p1810_p13, %p1804_p10 }
  0x24   :  { %1814 = shalt.err (!%p1811_p0)
}
  0x25   :  { %25 = dma.hbm_to_vmem [thread:$0]  %s1988_s0, 64, %s23_s16, [#allocation3]  }
  0x26   :  { %s1823_s21 = scalar_lea.vmem %s45_s1, 64  ;;  %p1828_p2 = scmp.lt.s32.totalorder %s45_s1, %s45_s1 }
  0x27   :  { %p1824_p1 = scmp.ne.s32.totalorder %s45_s1, %s1823_s21  ;;  %p1829_p3 = scmp.lt.s32.totalorder %s1823_s21, %s1823_s21 }
  0x29   :  { %p1830_p4 = por %p1829_p3, %p1828_p2 }
  0x2b   :  { %p1831_p5 = pnand %p1830_p4, %p1824_p1 }
  0x2d   :  { %1834 = shalt.err (!%p1831_p5)
}
  0x2e   :  { %47 = dma.hbm_to_vmem [thread:$0]  %s1990_s2, 64, %s45_s1, [#allocation6]  }
  0x2f   :  { %s1891_s23 = smov [#allocation10]  }
  0x30   :  { %s67_s24 = sshll.u32 %s1891_s23, 4  ;;  %s68_s24 = int_to_ptr.vmem [resolvable:$true] %s67_s24 }
  0x31   :  { %s1843_s25 = scalar_lea.vmem %s68_s24, 3072  ;;  %p1848_p7 = scmp.lt.s32.totalorder %s68_s24, %s68_s24 }
  0x32   :  { %p1844_p6 = scmp.ne.s32.totalorder %s68_s24, %s1843_s25  ;;  %p1849_p8 = scmp.lt.s32.totalorder %s1843_s25, %s1843_s25 }
  0x34   :  { %p1850_p9 = por %p1849_p8, %p1848_p7 }
  0x36   :  { %p1851_p10 = pnand %p1850_p9, %p1844_p6 }
  0x38   :  { %1854 = shalt.err (!%p1851_p10)
}
  0x39   :  { %s1892_s0 = smov 64   ;;  %s1893_s26 = smov 4  }
  0x3a   :  { %73 = dma.hbm_to_vmem [thread:$0]  %s1993_s5, 3072, %s68_s24, [#allocation9], %s1892_s0, %s1892_s0, %s1893_s26  }
  0x3b   :  { %1875 = dma.done.wait [#allocation3], 64  }
  0x3c   :  { %1876 = vsyncadd [#allocation3], 4294967232 }
  0x3d   :  { %1877 = dma.done.wait [#allocation6], 576  }
  0x3e   :  { %1878 = vsyncadd [#allocation6], 4294966720 }
  0x3f   :  { %1879 = dma.done.wait [#allocation9], 15360  }
  0x40   :  { %1880 = vsyncadd [#allocation9], 4294951936  ;;  %v1894_v0 = vmov 0   ;;  %v1595_v1 = vld [vmem:[#allocation5 + $0x4] ss:$16 sps:$4 sm:$0xff]   ;;  %vm139_vm0 = vcmask 130048  }
  0x41   :  { %175 = vmatprep.mubr.bf16.mxu0 %v1894_v0  ;;  %216 = vmatprep.mubr.bf16.mxu1 %v1894_v0  ;;  %v1597_v2 = vld [vmem:[#allocation5 + $0xc] ss:$16 sps:$4 sm:$0xff]   ;;  %v1599_v3 = vld [vmem:[#allocation5] ss:$16 sps:$4 sm:$0xff]   ;;  %v1600_v4 = vld [vmem:[#allocation5 + $0x8] ss:$16 sps:$4 sm:$0xff]  }
  0x42   :  { %157 = vmatprep.subr.bf16.mxu0 %v1595_v1  ;;  %v92_v5 = vld [vmem:[#allocation2] sm:$0xf]  ;;  %198 = vmatprep.subr.bf16.mxu1 %v1597_v2  ;;  %v1601_v6 = vld [vmem:[#allocation8 + $0xa8] ss:$12 sps:$4 sm:$0xff]   ;;  %v1607_v11 = vld [vmem:[#allocation8 + $0x90] ss:$12 sps:$4 sm:$0xff]  }
  0x43   :  { %158 = vmatpush1.bf16.msra.mxu0 %v1599_v3  ;;  %199 = vmatpush1.bf16.msra.mxu1 %v1600_v4  ;;  %v1603_v7 = vld [vmem:[#allocation8 + $0xac] ss:$12 sps:$4 sm:$0xff]   ;;  %v1604_v8 = vld [vmem:[#allocation8 + $0x228] ss:$12 sps:$4 sm:$0xff]   ;;  %v1610_v13 = vld [vmem:[#allocation8 + $0x210] ss:$12 sps:$4 sm:$0xff]  }
  0x44   :  { %v1606_v9 = vld [vmem:[#allocation8 + $0x22c] ss:$12 sps:$4 sm:$0xff]   ;;  %890 = vmatprep.subr.bf16.mxu0 %v1603_v7  ;;  %v1609_v10 = vld [vmem:[#allocation8 + $0x94] ss:$12 sps:$4 sm:$0xff]   ;;  %v1615_v14 = vld [vmem:[#allocation8 + $0x7c] ss:$12 sps:$4 sm:$0xff]  }
  0x45   :  { %931 = vmatprep.subr.bf16.mxu1 %v1606_v9  ;;  %v1612_v12 = vld [vmem:[#allocation8 + $0x214] ss:$12 sps:$4 sm:$0xff]   ;;  %v1618_v15 = vld [vmem:[#allocation8 + $0x1fc] ss:$12 sps:$4 sm:$0xff]   ;;  %v1613_v16 = vld [vmem:[#allocation8 + $0x78] ss:$12 sps:$4 sm:$0xff]  }
  0x46   :  { %1362 = vmatmul.mubr.msk.bf16.vlgmr.msra.gmra.mxu0 %vm139_vm0, %v92_v5  ;;  %1363 = vmatmul.mubr.msk.bf16.vlgmr.msra.gmra.mxu1 %vm139_vm0, %v92_v5  ;;  %v1616_v17 = vld [vmem:[#allocation8 + $0x1f8] ss:$12 sps:$4 sm:$0xff]   ;;  %v1619_v20 = vld [vmem:[#allocation8 + $0x60] ss:$12 sps:$4 sm:$0xff]   ;;  %v1625_v24 = vld [vmem:[#allocation8 + $0x48] ss:$12 sps:$4 sm:$0xff]  }
  0x47   :  { %891 = vmatpush1.bf16.msra.mxu0 %v1601_v6  ;;  %932 = vmatpush1.bf16.msra.mxu1 %v1604_v8  ;;  %v1621_v18 = vld [vmem:[#allocation8 + $0x64] ss:$12 sps:$4 sm:$0xff]   ;;  %v1622_v21 = vld [vmem:[#allocation8 + $0x1e0] ss:$12 sps:$4 sm:$0xff]   ;;  %v1628_v25 = vld [vmem:[#allocation8 + $0x1c8] ss:$12 sps:$4 sm:$0xff]   ;;  %v99_v8 = vlaneseq }
  0x48   :  { %892 = vmatprep.subr.bf16.mxu0 %v1609_v10  ;;  %933 = vmatprep.subr.bf16.mxu1 %v1612_v12  ;;  %v1624_v19 = vld [vmem:[#allocation8 + $0x1e4] ss:$12 sps:$4 sm:$0xff]   ;;  %v1627_v22 = vld [vmem:[#allocation8 + $0x4c] ss:$12 sps:$4 sm:$0xff]   ;;  %v1633_v26 = vld [vmem:[#allocation8 + $0x34] ss:$12 sps:$4 sm:$0xff]  }
  0x49   :  { %v1630_v23 = vld [vmem:[#allocation8 + $0x1cc] ss:$12 sps:$4 sm:$0xff]   ;;  %v1636_v27 = vld [vmem:[#allocation8 + $0x1b4] ss:$12 sps:$4 sm:$0xff]   ;;  %v1631_v28 = vld [vmem:[#allocation8 + $0x30] ss:$12 sps:$4 sm:$0xff]  }
  0x4a   :  { %v1634_v29 = vld [vmem:[#allocation8 + $0x1b0] ss:$12 sps:$4 sm:$0xff]   ;;  %v1637_v32 = vld [vmem:[#allocation8 + $0x18] ss:$12 sps:$4 sm:$0xff]   ;;  %v1643_v36 = vld [vmem:[#allocation8] ss:$12 sps:$4 sm:$0xff]  }
  0x4b   :  { %893 = vmatpush1.bf16.msra.mxu0 %v1607_v11  ;;  %934 = vmatpush1.bf16.msra.mxu1 %v1610_v13  ;;  %v1639_v30 = vld [vmem:[#allocation8 + $0x1c] ss:$12 sps:$4 sm:$0xff]   ;;  %v1640_v33 = vld [vmem:[#allocation8 + $0x198] ss:$12 sps:$4 sm:$0xff]   ;;  %v1646_v37 = vld [vmem:[#allocation8 + $0x180] ss:$12 sps:$4 sm:$0xff]  }
  0x4c   :  { %894 = vmatprep.subr.bf16.mxu0 %v1615_v14  ;;  %935 = vmatprep.subr.bf16.mxu1 %v1618_v15  ;;  %v1642_v31 = vld [vmem:[#allocation8 + $0x19c] ss:$12 sps:$4 sm:$0xff]   ;;  %v1645_v34 = vld [vmem:[#allocation8 + $0x4] ss:$12 sps:$4 sm:$0xff]   ;;  %v1651_v38 = vld [vmem:[#allocation8 + $0x16c] ss:$12 sps:$4 sm:$0xff]  }
  0x4d   :  { %v1648_v35 = vld [vmem:[#allocation8 + $0x184] ss:$12 sps:$4 sm:$0xff]   ;;  %v1654_v39 = vld [vmem:[#allocation8 + $0x2ec] ss:$12 sps:$4 sm:$0xff]   ;;  %v1649_v40 = vld [vmem:[#allocation8 + $0x168] ss:$12 sps:$4 sm:$0xff]  }
  0x4e   :  { %v1652_v41 = vld [vmem:[#allocation8 + $0x2e8] ss:$12 sps:$4 sm:$0xff]   ;;  %v1655_v43 = vld [vmem:[#allocation8 + $0x150] ss:$12 sps:$4 sm:$0xff]   ;;  %v1661_v48 = vld [vmem:[#allocation8 + $0x138] ss:$12 sps:$4 sm:$0xff]  }
  0x4f   :  { %895 = vmatpush1.bf16.msra.mxu0 %v1613_v16  ;;  %936 = vmatpush1.bf16.msra.mxu1 %v1616_v17  ;;  %v1657_v42 = vld [vmem:[#allocation8 + $0x154] ss:$12 sps:$4 sm:$0xff]   ;;  %v1658_v45 = vld [vmem:[#allocation8 + $0x2d0] ss:$12 sps:$4 sm:$0xff]   ;;  %v1664_v49 = vld [vmem:[#allocation8 + $0x2b8] ss:$12 sps:$4 sm:$0xff]  }
  0x50   :  { %896 = vmatprep.subr.bf16.mxu0 %v1621_v18  ;;  %937 = vmatprep.subr.bf16.mxu1 %v1624_v19  ;;  %v1660_v44 = vld [vmem:[#allocation8 + $0x2d4] ss:$12 sps:$4 sm:$0xff]   ;;  %v1663_v46 = vld [vmem:[#allocation8 + $0x13c] ss:$12 sps:$4 sm:$0xff]   ;;  %v1669_v50 = vld [vmem:[#allocation8 + $0x124] ss:$12 sps:$4 sm:$0xff]  }
  0x51   :  { %v1666_v47 = vld [vmem:[#allocation8 + $0x2bc] ss:$12 sps:$4 sm:$0xff]   ;;  %v1672_v51 = vld [vmem:[#allocation8 + $0x2a4] ss:$12 sps:$4 sm:$0xff]   ;;  %v1667_v52 = vld [vmem:[#allocation8 + $0x120] ss:$12 sps:$4 sm:$0xff]  }
  0x52   :  { %v1670_v53 = vld [vmem:[#allocation8 + $0x2a0] ss:$12 sps:$4 sm:$0xff]   ;;  %v1673_v56 = vld [vmem:[#allocation8 + $0x108] ss:$12 sps:$4 sm:$0xff]   ;;  %v1679_v60 = vld [vmem:[#allocation8 + $0xf0] ss:$12 sps:$4 sm:$0xff]  }
  0x53   :  { %897 = vmatpush1.bf16.msra.mxu0 %v1619_v20  ;;  %938 = vmatpush1.bf16.msra.mxu1 %v1622_v21  ;;  %v1675_v54 = vld [vmem:[#allocation8 + $0x10c] ss:$12 sps:$4 sm:$0xff]   ;;  %v1676_v57 = vld [vmem:[#allocation8 + $0x288] ss:$12 sps:$4 sm:$0xff]   ;;  %v1682_v61 = vld [vmem:[#allocation8 + $0x270] ss:$12 sps:$4 sm:$0xff]  }
  0x54   :  { %898 = vmatprep.subr.bf16.mxu0 %v1627_v22  ;;  %939 = vmatprep.subr.bf16.mxu1 %v1630_v23  ;;  %v1678_v55 = vld [vmem:[#allocation8 + $0x28c] ss:$12 sps:$4 sm:$0xff]   ;;  %v1681_v58 = vld [vmem:[#allocation8 + $0xf4] ss:$12 sps:$4 sm:$0xff]   ;;  %v1687_v62 = vld [vmem:[#allocation8 + $0xdc] ss:$12 sps:$4 sm:$0xff]  }
  0x55   :  { %v1684_v59 = vld [vmem:[#allocation8 + $0x274] ss:$12 sps:$4 sm:$0xff]   ;;  %v1690_v63 = vld [vmem:[#allocation8 + $0x25c] ss:$12 sps:$4 sm:$0xff]   ;;  %v1685_v0 = vld [vmem:[#allocation8 + $0xd8] ss:$12 sps:$4 sm:$0xff]  }
  0x56   :  { %v1688_v1 = vld [vmem:[#allocation8 + $0x258] ss:$12 sps:$4 sm:$0xff]   ;;  %v1691_v4 = vld [vmem:[#allocation8 + $0xc0] ss:$12 sps:$4 sm:$0xff]   ;;  %v1697_v6 = vld [vmem:[#allocation8 + $0x170] ss:$12 sps:$4 sm:$0xff]  }
  0x57   :  { %899 = vmatpush1.bf16.msra.mxu0 %v1625_v24  ;;  %940 = vmatpush1.bf16.msra.mxu1 %v1628_v25  ;;  %v1693_v2 = vld [vmem:[#allocation8 + $0xc4] ss:$12 sps:$4 sm:$0xff]   ;;  %v1694_v5 = vld [vmem:[#allocation8 + $0x240] ss:$12 sps:$4 sm:$0xff]   ;;  %v1953_v9 = vshrl.u32 %v99_v8, 7  ;;  %vm1896_vm1 = vmmov 0  }
  0x58   :  { %900 = vmatprep.subr.bf16.mxu0 %v1633_v26  ;;  %941 = vmatprep.subr.bf16.mxu1 %v1636_v27  ;;  %v1696_v3 = vld [vmem:[#allocation8 + $0x244] ss:$12 sps:$4 sm:$0xff]   ;;  %v97_v12 = vld [vmem:[#allocation7] sm:$0xf]  ;;  %s1897_s30 = smov [#allocation11]  }
  0x59   :  { %v1698_v7 = vld [vmem:[#allocation8 + $0x2f0] ss:$12 sps:$4 sm:$0xff]   ;;  %v101_v10 = vsub.s32 0, %v1953_v9  ;;  %v109_v11 = vsub.s32 2, %v1953_v9  ;;  %v105_v13 = vsub.s32 1, %v1953_v9  ;;  %v113_v14 = vsub.s32 3, %v1953_v9 }
  0x5a   :  { %v1732_v8 = vld [vmem:[#allocation10 + $0x30] sm:$0xff]   ;;  %v1460_v9 = vld [vmem:[%s1994_s6] ss:$0 sm:$0xff]  ;;  %s1347_s8 = sshll.u32 %s1897_s30, 4  ;;  %s1348_s8 = int_to_ptr.vmem [resolvable:$true] %s1347_s8 }
  0x5b   :  { %901 = vmatpush1.bf16.msra.mxu0 %v1631_v28  ;;  %942 = vmatpush1.bf16.msra.mxu1 %v1634_v29  ;;  %v102_v15 = vrot.slane %v97_v12, %v101_v10  ;;  %v110_v16 = vrot.slane %v97_v12, %v109_v11  ;;  %v106_v17 = vrot.slane %v97_v12, %v105_v13  ;;  %s1855_s9 = scalar_lea.vmem %s1348_s8, 64  ;;  %p1860_p12 = scmp.lt.s32.totalorder %s1348_s8, %s1348_s8 }
  0x5c   :  { %902 = vmatprep.subr.bf16.mxu0 %v1639_v30  ;;  %943 = vmatprep.subr.bf16.mxu1 %v1642_v31  ;;  %v114_v18 = vrot.slane %v97_v12, %v113_v14  ;;  %v1733_v12 = vld [vmem:[#allocation10 + $0x68] sm:$0xff]   ;;  %p1856_p11 = scmp.ne.s32.totalorder %s1348_s8, %s1855_s9  ;;  %p1861_p13 = scmp.lt.s32.totalorder %s1855_s9, %s1855_s9 }
  0x5d   :  { %v1734_v14 = vld [vmem:[#allocation10 + $0x28] sm:$0xff]  }
  0x5e   :  { %p1862_p0 = por %p1861_p13, %p1860_p12 }
  0x5f   :  { %903 = vmatpush1.bf16.msra.mxu0 %v1637_v32  ;;  %944 = vmatpush1.bf16.msra.mxu1 %v1640_v33 }
  0x60   :  { %904 = vmatprep.subr.bf16.mxu0 %v1645_v34  ;;  %945 = vmatprep.subr.bf16.mxu1 %v1648_v35  ;;  %p1863_p1 = pnand %p1862_p0, %p1856_p11 }
  0x63   :  { %905 = vmatpush1.bf16.msra.mxu0 %v1643_v36  ;;  %946 = vmatpush1.bf16.msra.mxu1 %v1646_v37 }
  0x64   :  { %906 = vmatprep.subr.bf16.mxu0 %v1651_v38  ;;  %947 = vmatprep.subr.bf16.mxu1 %v1654_v39  ;;  %v1699_v38 = vld [vmem:[#allocation8 + $0xb0] ss:$12 sps:$4 sm:$0xff]  }
  0x65   :  { %v1700_v39 = vld [vmem:[#allocation8 + $0x230] ss:$12 sps:$4 sm:$0xff]  }
  0x67   :  { %907 = vmatpush2.bf16.msra.mxu0 %v1649_v40  ;;  %948 = vmatpush2.bf16.msra.mxu1 %v1652_v41  ;;  %v1701_v41 = vld [vmem:[#allocation8 + $0x158] ss:$12 sps:$4 sm:$0xff]  }
  0x68   :  { %908 = vmatprep.subr.bf16.mxu0 %v1657_v42  ;;  %949 = vmatprep.subr.bf16.mxu1 %v1660_v44  ;;  %v1702_v42 = vld [vmem:[#allocation8 + $0x2d8] ss:$12 sps:$4 sm:$0xff]  }
  0x69   :  { %v1704_v44 = vld [vmem:[#allocation8 + $0x218] ss:$12 sps:$4 sm:$0xff]  }
  0x6b   :  { %909 = vmatpush2.bf16.msra.mxu0 %v1655_v43  ;;  %950 = vmatpush2.bf16.msra.mxu1 %v1658_v45  ;;  %v1703_v43 = vld [vmem:[#allocation8 + $0x98] ss:$12 sps:$4 sm:$0xff]   ;;  %v1705_v45 = vld [vmem:[#allocation8 + $0x140] ss:$12 sps:$4 sm:$0xff]  }
  0x6c   :  { %910 = vmatprep.subr.bf16.mxu0 %v1663_v46  ;;  %951 = vmatprep.subr.bf16.mxu1 %v1666_v47  ;;  %v1706_v46 = vld [vmem:[#allocation8 + $0x2c0] ss:$12 sps:$4 sm:$0xff]  }
  0x6d   :  { %v1707_v47 = vld [vmem:[#allocation8 + $0x80] ss:$12 sps:$4 sm:$0xff]  }
  0x6f   :  { %911 = vmatpush2.bf16.msra.mxu0 %v1661_v48  ;;  %952 = vmatpush2.bf16.msra.mxu1 %v1664_v49  ;;  %v1708_v48 = vld [vmem:[#allocation8 + $0x200] ss:$12 sps:$4 sm:$0xff]   ;;  %v1709_v49 = vld [vmem:[#allocation8 + $0x128] ss:$12 sps:$4 sm:$0xff]  }
  0x70   :  { %912 = vmatprep.subr.bf16.mxu0 %v1669_v50  ;;  %953 = vmatprep.subr.bf16.mxu1 %v1672_v51  ;;  %v1710_v50 = vld [vmem:[#allocation8 + $0x2a8] ss:$12 sps:$4 sm:$0xff]  }
  0x71   :  { %v1711_v51 = vld [vmem:[#allocation8 + $0x68] ss:$12 sps:$4 sm:$0xff]  }
  0x73   :  { %913 = vmatpush2.bf16.msra.mxu0 %v1667_v52  ;;  %954 = vmatpush2.bf16.msra.mxu1 %v1670_v53  ;;  %v1712_v52 = vld [vmem:[#allocation8 + $0x1e8] ss:$12 sps:$4 sm:$0xff]   ;;  %v1713_v53 = vld [vmem:[#allocation8 + $0x110] ss:$12 sps:$4 sm:$0xff]  }
  0x74   :  { %914 = vmatprep.subr.bf16.mxu0 %v1675_v54  ;;  %955 = vmatprep.subr.bf16.mxu1 %v1678_v55  ;;  %v1714_v54 = vld [vmem:[#allocation8 + $0x290] ss:$12 sps:$4 sm:$0xff]  }
  0x75   :  { %v1715_v55 = vld [vmem:[#allocation8 + $0x50] ss:$12 sps:$4 sm:$0xff]  }
  0x77   :  { %915 = vmatpush2.bf16.msra.mxu0 %v1673_v56  ;;  %956 = vmatpush2.bf16.msra.mxu1 %v1676_v57  ;;  %v1716_v56 = vld [vmem:[#allocation8 + $0x1d0] ss:$12 sps:$4 sm:$0xff]   ;;  %v1717_v57 = vld [vmem:[#allocation8 + $0xf8] ss:$12 sps:$4 sm:$0xff]  }
  0x78   :  { %916 = vmatprep.subr.bf16.mxu0 %v1681_v58  ;;  %957 = vmatprep.subr.bf16.mxu1 %v1684_v59  ;;  %v1718_v58 = vld [vmem:[#allocation8 + $0x278] ss:$12 sps:$4 sm:$0xff]  }
  0x79   :  { %v1719_v59 = vld [vmem:[#allocation8 + $0x38] ss:$12 sps:$4 sm:$0xff]  }
  0x7b   :  { %917 = vmatpush2.bf16.msra.mxu0 %v1679_v60  ;;  %958 = vmatpush2.bf16.msra.mxu1 %v1682_v61  ;;  %v1720_v60 = vld [vmem:[#allocation8 + $0x1b8] ss:$12 sps:$4 sm:$0xff]   ;;  %v1721_v61 = vld [vmem:[#allocation8 + $0xe0] ss:$12 sps:$4 sm:$0xff]  }
  0x7c   :  { %918 = vmatprep.subr.bf16.mxu0 %v1687_v62  ;;  %959 = vmatprep.subr.bf16.mxu1 %v1690_v63  ;;  %v1722_v62 = vld [vmem:[#allocation8 + $0x260] ss:$12 sps:$4 sm:$0xff]  }
  0x7d   :  { %v1723_v63 = vld [vmem:[#allocation8 + $0x20] ss:$12 sps:$4 sm:$0xff]  }
  0x7f   :  { %919 = vmatpush2.bf16.msra.mxu0 %v1685_v0  ;;  %960 = vmatpush2.bf16.msra.mxu1 %v1688_v1  ;;  %v1724_v0 = vld [vmem:[#allocation8 + $0x1a0] ss:$12 sps:$4 sm:$0xff]   ;;  %v1725_v1 = vld [vmem:[#allocation8 + $0xc8] ss:$12 sps:$4 sm:$0xff]  }
  0x80   :  { %920 = vmatprep.subr.bf16.mxu0 %v1693_v2  ;;  %961 = vmatprep.subr.bf16.mxu1 %v1696_v3  ;;  %v1726_v2 = vld [vmem:[#allocation8 + $0x248] ss:$12 sps:$4 sm:$0xff]  }
  0x81   :  { %v1727_v3 = vld [vmem:[#allocation8 + $0x8] ss:$12 sps:$4 sm:$0xff]  }
  0x83   :  { %921 = vmatpush2.bf16.msra.mxu0 %v1691_v4  ;;  %962 = vmatpush2.bf16.msra.mxu1 %v1694_v5  ;;  %v1728_v4 = vld [vmem:[#allocation8 + $0x188] ss:$12 sps:$4 sm:$0xff]   ;;  %v1729_v5 = vld [vmem:[#allocation10 + $0x78] sm:$0xff]  }
  0x84   :  { %1485 = vmatprep.subr.bf16.mxu0 %v1697_v6  ;;  %1507 = vmatprep.subr.bf16.mxu1 %v1698_v7  ;;  %v1730_v6 = vld [vmem:[#allocation10 + $0x38] sm:$0xff]   ;;  %v1731_v7 = vld [vmem:[#allocation10 + $0x70] sm:$0xff]  }
 0x106   :  { %v177_v19 = vpop.f32.mrf.mxu0  ;;  %v218_v20 = vpop.f32.mrf.mxu1 }
 0x107   :  { %v178_v21 = vadd.f32 %v177_v19, %v102_v15  ;;  %v219_v22 = vadd.f32 %v218_v20, %v110_v16  ;;  %v1735_v15 = vld [vmem:[#allocation10 + $0x60] sm:$0xff]   ;;  %v1739_v19 = vld [vmem:[#allocation10 + $0x50] sm:$0xff]  }
 0x108   :  { %v179_v23 = vpop.f32.mrf.mxu0  ;;  %v220_v24 = vpop.f32.mrf.mxu1  ;;  %v1736_v16 = vld [vmem:[#allocation10 + $0x20] sm:$0xff]   ;;  %v1740_v20 = vld [vmem:[#allocation10 + $0x10] sm:$0xff]  }
 0x109   :  { %v227_v25 = vmax.f32 %v219_v22, 0.0  ;;  %v180_v26 = vadd.f32 %v179_v23, %v106_v17  ;;  %v221_v27 = vadd.f32 %v220_v24, %v114_v18  ;;  %v225_v28 = vmax.f32 %v178_v21, 0.0  ;;  %v1737_v17 = vld [vmem:[#allocation10 + $0x58] sm:$0xff]   ;;  %v1741_v21 = vld [vmem:[#allocation10 + $0x48] sm:$0xff]   ;;  %v1743_v23 = vld [vmem:[#allocation10 + $0x40] sm:$0xff]  }
 0x10a   :  { %v181_v29 = vpop.f32.mrf.mxu0  ;;  %v222_v30 = vpop.f32.mrf.mxu1  ;;  %v1738_v18 = vld [vmem:[#allocation10 + $0x18] sm:$0xff]   ;;  %v1742_v22 = vld [vmem:[#allocation10 + $0x8] sm:$0xff]   ;;  %v1744_v24 = vld [vmem:[#allocation10] sm:$0xff]  }
 0x10b   :  { %v226_v31 = vmax.f32 %v180_v26, 0.0  ;;  %v228_v32 = vmax.f32 %v221_v27, 0.0  ;;  %v1965_v33 = vpack.c.bf16 %v227_v25, %v227_v25  ;;  %v1967_v40 = vpack.c.bf16 %v225_v28, %v225_v28  ;;  %v1745_v25 = vld [vmem:[#allocation10 + $0xb8] sm:$0xff]   ;;  %v1746_v27 = vld [vmem:[#allocation10 + $0xb0] sm:$0xff]   ;;  %v1747_v28 = vld [vmem:[#allocation10 + $0xa8] sm:$0xff]  }
 0x10c   :  { %v182_v34 = vpop.f32.mrf.mxu0  ;;  %v223_v35 = vpop.f32.mrf.mxu1  ;;  %v1895_v26 = vmov 0.0   ;;  %v1748_v29 = vld [vmem:[#allocation10 + $0xa0] sm:$0xff]   ;;  %v1749_v30 = vld [vmem:[#allocation10 + $0x98] sm:$0xff]  }
 0x10d   :  { %v230_v36 = vpack.c.bf16 %v226_v31, %v226_v31  ;;  %v232_v37 = vpack.c.bf16 %v228_v32, %v228_v32  ;;  %v1750_v31 = vld [vmem:[#allocation10 + $0x90] sm:$0xff]   ;;  %v1751_v32 = vld [vmem:[#allocation10 + $0x88] sm:$0xff]   ;;  %v361_v34 = vld [vmem:[%s1992_s4] sm:$0x7] }
 0x10e   :  { %v366_v35 = vrot.slane %v361_v34, %v101_v10 }
 0x10f   :  { %922 = vmatprep.mubr.bf16.mxu0 %v230_v36  ;;  %963 = vmatprep.mubr.bf16.mxu1 %v232_v37 }
 0x110   :  { %923 = vmatmul.mubr.bf16.vlgmr.msra.gmra.mxu0 %v1967_v40  ;;  %964 = vmatmul.mubr.bf16.vlgmr.msra.gmra.mxu1 %v1965_v33 }
 0x111   :  { %1486 = vmatpush3.bf16.msra.mxu0 %v1699_v38  ;;  %1508 = vmatpush3.bf16.msra.mxu1 %v1700_v39 }
 0x112   :  { %1004 = vmatprep.mubr.bf16.mxu0 %v230_v36  ;;  %1044 = vmatprep.mubr.bf16.mxu1 %v232_v37  ;;  %v370_v36 = vrot.slane %v361_v34, %v105_v13 }
 0x113   :  { %1487 = vmatprep.subr.bf16.mxu0 %v1701_v41  ;;  %1509 = vmatprep.subr.bf16.mxu1 %v1702_v42 }
 0x115   :  { %1488 = vmatpush3.bf16.msra.mxu0 %v1703_v43  ;;  %1510 = vmatpush3.bf16.msra.mxu1 %v1704_v44 }
 0x116   :  { %1489 = vmatprep.subr.bf16.mxu0 %v1705_v45  ;;  %1511 = vmatprep.subr.bf16.mxu1 %v1706_v46 }
 0x119   :  { %1490 = vmatpush3.bf16.msra.mxu0 %v1707_v47  ;;  %1512 = vmatpush3.bf16.msra.mxu1 %v1708_v48 }
 0x11a   :  { %1491 = vmatprep.subr.bf16.mxu0 %v1709_v49  ;;  %1513 = vmatprep.subr.bf16.mxu1 %v1710_v50 }
 0x11d   :  { %1492 = vmatpush3.bf16.msra.mxu0 %v1711_v51  ;;  %1514 = vmatpush3.bf16.msra.mxu1 %v1712_v52 }
 0x11e   :  { %1493 = vmatprep.subr.bf16.mxu0 %v1713_v53  ;;  %1515 = vmatprep.subr.bf16.mxu1 %v1714_v54  ;;  %v374_v53 = vrot.slane %v361_v34, %v109_v11 }
 0x121   :  { %1494 = vmatpush3.bf16.msra.mxu0 %v1715_v55  ;;  %1516 = vmatpush3.bf16.msra.mxu1 %v1716_v56 }
 0x122   :  { %1495 = vmatprep.subr.bf16.mxu0 %v1717_v57  ;;  %1517 = vmatprep.subr.bf16.mxu1 %v1718_v58 }
 0x125   :  { %1496 = vmatpush3.bf16.msra.mxu0 %v1719_v59  ;;  %1518 = vmatpush3.bf16.msra.mxu1 %v1720_v60 }
 0x126   :  { %1497 = vmatprep.subr.bf16.mxu0 %v1721_v61  ;;  %1519 = vmatprep.subr.bf16.mxu1 %v1722_v62 }
 0x129   :  { %1498 = vmatpush3.bf16.msra.mxu0 %v1723_v63  ;;  %1520 = vmatpush3.bf16.msra.mxu1 %v1724_v0 }
 0x12a   :  { %1499 = vmatprep.subr.bf16.mxu0 %v1725_v1  ;;  %1521 = vmatprep.subr.bf16.mxu1 %v1726_v2 }
 0x12d   :  { %1500 = vmatpush3.bf16.msra.mxu0 %v1727_v3  ;;  %1522 = vmatpush3.bf16.msra.mxu1 %v1728_v4 }
 0x12e   :  { %1529 = vmatprep.subr.bf16.mxu0 %v1729_v5  ;;  %1560 = vmatprep.subr.bf16.mxu1 %v1895_v26 }
 0x130   :  { %1005 = vmatmul.mubr.bf16.vlgmr.msra.gmra.mxu0 %v1967_v40  ;;  %1045 = vmatmul.mubr.bf16.vlgmr.msra.gmra.mxu1 %v1965_v33  ;;  %v1752_v33 = vld [vmem:[#allocation10 + $0x80] sm:$0xff]  }
 0x131   :  { %1530 = vmatpush3.bf16.msra.mxu0 %v1730_v6  ;;  %1561 = vmatpush3.bf16.msra.mxu1 %v1745_v25 }
 0x132   :  { %1531 = vmatprep.subr.bf16.mxu0 %v1731_v7  ;;  %1562 = vmatprep.subr.bf16.mxu1 %v1895_v26 }
 0x133   :  { %1576 = vmatprep.mubr.msk.bf16.mxu1 %vm1896_vm1, %v1895_v26 }
 0x135   :  { %1532 = vmatpush3.bf16.msra.mxu0 %v1732_v8  ;;  %1563 = vmatpush3.bf16.msra.mxu1 %v1746_v27 }
 0x136   :  { %1533 = vmatprep.subr.bf16.mxu0 %v1733_v12  ;;  %1564 = vmatprep.subr.bf16.mxu1 %v1895_v26 }
 0x139   :  { %1534 = vmatpush3.bf16.msra.mxu0 %v1734_v14  ;;  %1565 = vmatpush3.bf16.msra.mxu1 %v1747_v28 }
 0x13a   :  { %1535 = vmatprep.subr.bf16.mxu0 %v1735_v15  ;;  %1566 = vmatprep.subr.bf16.mxu1 %v1895_v26 }
 0x13d   :  { %1536 = vmatpush3.bf16.msra.mxu0 %v1736_v16  ;;  %1567 = vmatpush3.bf16.msra.mxu1 %v1748_v29 }
 0x13e   :  { %1537 = vmatprep.subr.bf16.mxu0 %v1737_v17  ;;  %1568 = vmatprep.subr.bf16.mxu1 %v1895_v26 }
 0x141   :  { %1538 = vmatpush3.bf16.msra.mxu0 %v1738_v18  ;;  %1569 = vmatpush3.bf16.msra.mxu1 %v1749_v30 }
 0x142   :  { %1539 = vmatprep.subr.bf16.mxu0 %v1739_v19  ;;  %1570 = vmatprep.subr.bf16.mxu1 %v1895_v26 }
 0x145   :  { %1540 = vmatpush3.bf16.msra.mxu0 %v1740_v20  ;;  %1571 = vmatpush3.bf16.msra.mxu1 %v1750_v31 }
 0x146   :  { %1541 = vmatprep.subr.bf16.mxu0 %v1741_v21  ;;  %1572 = vmatprep.subr.bf16.mxu1 %v1895_v26 }
 0x149   :  { %1542 = vmatpush3.bf16.msra.mxu0 %v1742_v22  ;;  %1573 = vmatpush3.bf16.msra.mxu1 %v1751_v32 }
 0x14a   :  { %1543 = vmatprep.subr.bf16.mxu0 %v1743_v23  ;;  %1574 = vmatprep.subr.bf16.mxu1 %v1895_v26 }
 0x14d   :  { %1544 = vmatpush3.bf16.msra.mxu0 %v1744_v24  ;;  %1575 = vmatpush3.bf16.msra.mxu1 %v1752_v33 }
 0x1d0   :  { %v924_v37 = vpop.f32.mrf.mxu0  ;;  %v965_v38 = vpop.f32.mrf.mxu1 }
 0x1d1   :  { %v925_v39 = vadd.f32 %v924_v37, %v366_v35 }
 0x1d2   :  { %v926_v40 = vpop.f32.mrf.mxu0  ;;  %v967_v41 = vpop.f32.mrf.mxu1 }
 0x1d3   :  { %v966_v42 = vadd.f32 %v965_v38, %v925_v39  ;;  %v927_v43 = vadd.f32 %v926_v40, %v370_v36 }
 0x1d4   :  { %v928_v44 = vpop.f32.mrf.mxu0  ;;  %v969_v45 = vpop.f32.mrf.mxu1 }
 0x1d5   :  { %v968_v46 = vadd.f32 %v967_v41, %v927_v43  ;;  %v1052_v47 = vmax.f32 %v966_v42, 0.0 }
 0x1d6   :  { %v929_v48 = vpop.f32.mrf.mxu0  ;;  %v970_v49 = vpop.f32.mrf.mxu1 }
 0x1d7   :  { %v1053_v50 = vmax.f32 %v968_v46, 0.0  ;;  %v1055_v52 = vpack.c.bf16 %v1052_v47, %v1052_v47 }
 0x1d9   :  { %v1056_v51 = vpack.c.bf16 %v1053_v50, %v1053_v50 }
 0x1db   :  { %1289 = vmatprep.mubr.bf16.mxu0 %v1056_v51 }
 0x1dc   :  { %1290 = vmatmul.mubr.bf16.vlgmr.msra.gmra.mxu0 %v1055_v52 }
 0x1f0   :  { %v1501_v10 = vpop.f32.mrf.mxu0  ;;  %v1523_v13 = vpop.f32.mrf.mxu1 }
 0x1f2   :  { %v1502_v54 = vpop.f32.mrf.mxu0  ;;  %v1524_v55 = vpop.f32.mrf.mxu1 }
 0x1f3   :  { %v1503_v56 = vadd.f32 %v1502_v54, %v1501_v10  ;;  %v1525_v60 = vadd.f32 %v1524_v55, %v1523_v13 }
 0x1f4   :  { %v1504_v57 = vpop.f32.mrf.mxu0  ;;  %v1526_v58 = vpop.f32.mrf.mxu1 }
 0x1f5   :  { %v1007_v59 = vadd.f32 %v1503_v56, %v374_v53 }
 0x1f6   :  { %v1505_v61 = vpop.f32.mrf.mxu0  ;;  %v1527_v62 = vpop.f32.mrf.mxu1 }
 0x1f7   :  { %v1047_v63 = vadd.f32 %v1525_v60, %v1007_v59 }
 0x1f9   :  { %v1054_v0 = vmax.f32 %v1047_v63, 0.0 }
 0x1fb   :  { %v1057_v1 = vpack.c.bf16 %v1054_v0, %v1054_v0 }
 0x1fd   :  { %1577 = vmatmul.mubr.bf16.vlgmr.msra.gmra.mxu1 %v1057_v1 }
 0x29c   :  { %v1545_v2 = vpop.f32.mrf.mxu0 }
 0x29e   :  { %v1546_v3 = vpop.f32.mrf.mxu0 }
 0x29f   :  { %v1547_v6 = vadd.f32 %v1546_v3, %v1545_v2 }
 0x2a0   :  { %v1548_v4 = vpop.f32.mrf.mxu0 }
 0x2a1   :  { %v1292_v11 = vadd.f32 %v1547_v6, %v1460_v9 }
 0x2a2   :  { %v1549_v5 = vpop.f32.mrf.mxu0 }
 0x2bd   :  { %v1331_v7 = vpop.f32.mrf.mxu1 }
 0x2be   :  { %v1332_v8 = vadd.f32 %v1331_v7, %v1292_v11 }
 0x2bf   :  { %v1578_v12 = vpop.f32.mrf.mxu1 }
 0x2c0   :  { %1753 = vtanh.f32 %v1332_v8 }
 0x2c1   :  { %v1334_v14 = vpop.f32.mrf.mxu1 }
 0x2c3   :  { %v1579_v15 = vpop.f32.mrf.mxu1 }
 0x2cd   :  { %v1754_v16 = vpop.eup %1753 }
 0x2ce   :  { %v1338_v17 = vmul.f32 2.0, %v1754_v16 }
 0x2d0   :  { %v1339_v18 = vpack.c.bf16 %v1338_v17, %v1338_v17 }
 0x2d2   :  { %1340 = vst [vmem:[#allocation11] sm:$0xf] %v1339_v18 }
 0x2d3   :  { %1866 = shalt.err (!%p1863_p1)
}
 0x2d4   :  { %1350 = dma.vmem_to_hbm [thread:$0]  %s1348_s8, 64, %s1995_s7, [#allocation4]  }
 0x2d5   :  { %1881 = dma.done.wait [#allocation4], 64  }
 0x2d6   :  { %1882 = vsyncadd [#allocation4], 4294967232 }
 0x2d7   :  { %1354 = vsyncpa [#allocation3], 1 }
 0x2d8   :  { %1355 = vsyncpa [#allocation6], 1 }
 0x2d9   :  { %1356 = vsyncpa [#allocation9], 1 }
 0x2da   :  { %1357 = vsyncpa [#allocation4], 1 }

// kernel: tpu_custom_call.1
= control target key start
LH: loop header
LB: loop body
LE: loop exit
PB: predicated region body
PF: predicated region fallthrough
CT: control target
= control target key end

     0   :  { %12 = vsyncpa [#allocation3], 0  ;;  %s1988_s0 = inlined_call_operand.hbm [shape: bf16[8,16], index: 0, kind: input, shape index: {}]   ;;  %s1989_s1 = inlined_call_operand.hbm [shape: bf16[16,512], index: 1, kind: input, shape index: {}]   ;;  %s1990_s2 = inlined_call_operand.hbm [shape: f32[1,512], index: 2, kind: input, shape index: {}]   ;;  %s1991_s3 = inlined_call_operand.hbm [shape: bf16[512,384], index: 3, kind: input, shape index: {}]   ;;  %s1992_s4 = inlined_call_operand.vmem [shape: f32[1,384], index: 4, kind: input, shape index: {}]   ;;  %s1993_s5 = inlined_call_operand.hbm [shape: bf16[384,128], index: 5, kind: input, shape index: {}]   ;;  %s1994_s6 = inlined_call_operand.vmem [shape: f32[1,128], index: 6, kind: input, shape index: {}]   ;;  %s1995_s7 = inlined_call_operand.hbm [shape: bf16[8,128], index: 7, kind: output, shape index: {}]  }
   0x1   :  { %13 = vsyncpa [#allocation6], 0 }
   0x2   :  { %14 = vsyncpa [#allocation9], 0 }
   0x3   :  { %15 = vsyncpa [#allocation4], 0  ;;  %s1883_s24 = smov [#allocation5]  }
   0x4   :  { %s31_s25 = sshll.u32 %s1883_s24, 4  ;;  %s32_s25 = int_to_ptr.vmem [resolvable:$true] %s31_s25 }
   0x5   :  { %s1763_s26 = scalar_lea.vmem %s32_s25, 512  ;;  %p1768_p1 = scmp.lt.s32.totalorder %s32_s25, %s32_s25 }
   0x6   :  { %p1764_p0 = scmp.ne.s32.totalorder %s32_s25, %s1763_s26  ;;  %p1769_p2 = scmp.lt.s32.totalorder %s1763_s26, %s1763_s26 }
   0x8   :  { %p1770_p3 = por %p1769_p2, %p1768_p1 }
   0xa   :  { %p1771_p4 = pnand %p1770_p3, %p1764_p0 }
   0xc   :  { %1774 = shalt.err (!%p1771_p4)
}
   0xd   :  { %s1884_s27 = smov 256   ;;  %s1885_s28 = smov 16  }
   0xe   :  { %37 = dma.hbm_to_vmem [thread:$0]  %s1989_s1, 512, %s32_s25, [#allocation6], %s1884_s27, %s1884_s27, %s1885_s28  }
   0xf   :  { %s1886_s8 = smov [#allocation8]  }
  0x10   :  { %s53_s9 = sshll.u32 %s1886_s8, 4  ;;  %s54_s9 = int_to_ptr.vmem [resolvable:$true] %s53_s9 }
  0x11   :  { %s1783_s10 = scalar_lea.vmem %s54_s9, 12288  ;;  %p1788_p6 = scmp.lt.s32.totalorder %s54_s9, %s54_s9 }
  0x12   :  { %p1784_p5 = scmp.ne.s32.totalorder %s54_s9, %s1783_s10  ;;  %p1789_p7 = scmp.lt.s32.totalorder %s1783_s10, %s1783_s10 }
  0x14   :  { %p1790_p8 = por %p1789_p7, %p1788_p6 }
  0x16   :  { %p1791_p9 = pnand %p1790_p8, %p1784_p5 }
  0x18   :  { %1794 = shalt.err (!%p1791_p9)
}
  0x19   :  { %s1887_s11 = smov 192   ;;  %s1888_s12 = smov 12  }
  0x1a   :  { %59 = dma.hbm_to_vmem [thread:$0]  %s1991_s3, 12288, %s54_s9, [#allocation9], %s1887_s11, %s1887_s11, %s1888_s12  }
  0x1b   :  { %s1889_s15 = smov [#allocation2]   ;;  %s1890_s17 = smov [#allocation7]  }
  0x1c   :  { %s22_s16 = sshll.u32 %s1889_s15, 4  ;;  %s44_s1 = sshll.u32 %s1890_s17, 4  ;;  %s23_s16 = int_to_ptr.vmem [resolvable:$true] %s22_s16  ;;  %s45_s1 = int_to_ptr.vmem [resolvable:$true] %s44_s1 }
  0x1d   :  { %s1803_s18 = scalar_lea.vmem %s23_s16, 64  ;;  %p1808_p11 = scmp.lt.s32.totalorder %s23_s16, %s23_s16 }
  0x1e   :  { %p1804_p10 = scmp.ne.s32.totalorder %s23_s16, %s1803_s18  ;;  %p1809_p12 = scmp.lt.s32.totalorder %s1803_s18, %s1803_s18 }
  0x20   :  { %p1810_p13 = por %p1809_p12, %p1808_p11 }
  0x22   :  { %p1811_p0 = pnand %p1810_p13, %p1804_p10 }
  0x24   :  { %1814 = shalt.err (!%p1811_p0)
}
  0x25   :  { %25 = dma.hbm_to_vmem [thread:$0]  %s1988_s0, 64, %s23_s16, [#allocation3]  }
  0x26   :  { %s1823_s21 = scalar_lea.vmem %s45_s1, 64  ;;  %p1828_p2 = scmp.lt.s32.totalorder %s45_s1, %s45_s1 }
  0x27   :  { %p1824_p1 = scmp.ne.s32.totalorder %s45_s1, %s1823_s21  ;;  %p1829_p3 = scmp.lt.s32.totalorder %s1823_s21, %s1823_s21 }
  0x29   :  { %p1830_p4 = por %p1829_p3, %p1828_p2 }
  0x2b   :  { %p1831_p5 = pnand %p1830_p4, %p1824_p1 }
  0x2d   :  { %1834 = shalt.err (!%p1831_p5)
}
  0x2e   :  { %47 = dma.hbm_to_vmem [thread:$0]  %s1990_s2, 64, %s45_s1, [#allocation6]  }
  0x2f   :  { %s1891_s23 = smov [#allocation10]  }
  0x30   :  { %s67_s24 = sshll.u32 %s1891_s23, 4  ;;  %s68_s24 = int_to_ptr.vmem [resolvable:$true] %s67_s24 }
  0x31   :  { %s1843_s25 = scalar_lea.vmem %s68_s24, 3072  ;;  %p1848_p7 = scmp.lt.s32.totalorder %s68_s24, %s68_s24 }
  0x32   :  { %p1844_p6 = scmp.ne.s32.totalorder %s68_s24, %s1843_s25  ;;  %p1849_p8 = scmp.lt.s32.totalorder %s1843_s25, %s1843_s25 }
  0x34   :  { %p1850_p9 = por %p1849_p8, %p1848_p7 }
  0x36   :  { %p1851_p10 = pnand %p1850_p9, %p1844_p6 }
  0x38   :  { %1854 = shalt.err (!%p1851_p10)
}
  0x39   :  { %s1892_s0 = smov 64   ;;  %s1893_s26 = smov 4  }
  0x3a   :  { %73 = dma.hbm_to_vmem [thread:$0]  %s1993_s5, 3072, %s68_s24, [#allocation9], %s1892_s0, %s1892_s0, %s1893_s26  }
  0x3b   :  { %1875 = dma.done.wait [#allocation3], 64  }
  0x3c   :  { %1876 = vsyncadd [#allocation3], 4294967232 }
  0x3d   :  { %1877 = dma.done.wait [#allocation6], 576  }
  0x3e   :  { %1878 = vsyncadd [#allocation6], 4294966720 }
  0x3f   :  { %1879 = dma.done.wait [#allocation9], 15360  }
  0x40   :  { %1880 = vsyncadd [#allocation9], 4294951936  ;;  %v1894_v0 = vmov 0   ;;  %v1595_v1 = vld [vmem:[#allocation5 + $0x4] ss:$16 sps:$4 sm:$0xff]   ;;  %vm139_vm0 = vcmask 130048  }
  0x41   :  { %175 = vmatprep.mubr.bf16.mxu0 %v1894_v0  ;;  %216 = vmatprep.mubr.bf16.mxu1 %v1894_v0  ;;  %v1597_v2 = vld [vmem:[#allocation5 + $0xc] ss:$16 sps:$4 sm:$0xff]   ;;  %v1599_v3 = vld [vmem:[#allocation5] ss:$16 sps:$4 sm:$0xff]   ;;  %v1600_v4 = vld [vmem:[#allocation5 + $0x8] ss:$16 sps:$4 sm:$0xff]  }
  0x42   :  { %157 = vmatprep.subr.bf16.mxu0 %v1595_v1  ;;  %v92_v5 = vld [vmem:[#allocation2] sm:$0xf]  ;;  %198 = vmatprep.subr.bf16.mxu1 %v1597_v2  ;;  %v1601_v6 = vld [vmem:[#allocation8 + $0xa8] ss:$12 sps:$4 sm:$0xff]   ;;  %v1607_v11 = vld [vmem:[#allocation8 + $0x90] ss:$12 sps:$4 sm:$0xff]  }
  0x43   :  { %158 = vmatpush1.bf16.msra.mxu0 %v1599_v3  ;;  %199 = vmatpush1.bf16.msra.mxu1 %v1600_v4  ;;  %v1603_v7 = vld [vmem:[#allocation8 + $0xac] ss:$12 sps:$4 sm:$0xff]   ;;  %v1604_v8 = vld [vmem:[#allocation8 + $0x228] ss:$12 sps:$4 sm:$0xff]   ;;  %v1610_v13 = vld [vmem:[#allocation8 + $0x210] ss:$12 sps:$4 sm:$0xff]  }
  0x44   :  { %v1606_v9 = vld [vmem:[#allocation8 + $0x22c] ss:$12 sps:$4 sm:$0xff]   ;;  %890 = vmatprep.subr.bf16.mxu0 %v1603_v7  ;;  %v1609_v10 = vld [vmem:[#allocation8 + $0x94] ss:$12 sps:$4 sm:$0xff]   ;;  %v1615_v14 = vld [vmem:[#allocation8 + $0x7c] ss:$12 sps:$4 sm:$0xff]  }
  0x45   :  { %931 = vmatprep.subr.bf16.mxu1 %v1606_v9  ;;  %v1612_v12 = vld [vmem:[#allocation8 + $0x214] ss:$12 sps:$4 sm:$0xff]   ;;  %v1618_v15 = vld [vmem:[#allocation8 + $0x1fc] ss:$12 sps:$4 sm:$0xff]   ;;  %v1613_v16 = vld [vmem:[#allocation8 + $0x78] ss:$12 sps:$4 sm:$0xff]  }
  0x46   :  { %1362 = vmatmul.mubr.msk.bf16.vlgmr.msra.gmra.mxu0 %vm139_vm0, %v92_v5  ;;  %1363 = vmatmul.mubr.msk.bf16.vlgmr.msra.gmra.mxu1 %vm139_vm0, %v92_v5  ;;  %v1616_v17 = vld [vmem:[#allocation8 + $0x1f8] ss:$12 sps:$4 sm:$0xff]   ;;  %v1619_v20 = vld [vmem:[#allocation8 + $0x60] ss:$12 sps:$4 sm:$0xff]   ;;  %v1625_v24 = vld [vmem:[#allocation8 + $0x48] ss:$12 sps:$4 sm:$0xff]  }
  0x47   :  { %891 = vmatpush1.bf16.msra.mxu0 %v1601_v6  ;;  %932 = vmatpush1.bf16.msra.mxu1 %v1604_v8  ;;  %v1621_v18 = vld [vmem:[#allocation8 + $0x64] ss:$12 sps:$4 sm:$0xff]   ;;  %v1622_v21 = vld [vmem:[#allocation8 + $0x1e0] ss:$12 sps:$4 sm:$0xff]   ;;  %v1628_v25 = vld [vmem:[#allocation8 + $0x1c8] ss:$12 sps:$4 sm:$0xff]   ;;  %v99_v8 = vlaneseq }
  0x48   :  { %892 = vmatprep.subr.bf16.mxu0 %v1609_v10  ;;  %933 = vmatprep.subr.bf16.mxu1 %v1612_v12  ;;  %v1624_v19 = vld [vmem:[#allocation8 + $0x1e4] ss:$12 sps:$4 sm:$0xff]   ;;  %v1627_v22 = vld [vmem:[#allocation8 + $0x4c] ss:$12 sps:$4 sm:$0xff]   ;;  %v1633_v26 = vld [vmem:[#allocation8 + $0x34] ss:$12 sps:$4 sm:$0xff]  }
  0x49   :  { %v1630_v23 = vld [vmem:[#allocation8 + $0x1cc] ss:$12 sps:$4 sm:$0xff]   ;;  %v1636_v27 = vld [vmem:[#allocation8 + $0x1b4] ss:$12 sps:$4 sm:$0xff]   ;;  %v1631_v28 = vld [vmem:[#allocation8 + $0x30] ss:$12 sps:$4 sm:$0xff]  }
  0x4a   :  { %v1634_v29 = vld [vmem:[#allocation8 + $0x1b0] ss:$12 sps:$4 sm:$0xff]   ;;  %v1637_v32 = vld [vmem:[#allocation8 + $0x18] ss:$12 sps:$4 sm:$0xff]   ;;  %v1643_v36 = vld [vmem:[#allocation8] ss:$12 sps:$4 sm:$0xff]  }
  0x4b   :  { %893 = vmatpush1.bf16.msra.mxu0 %v1607_v11  ;;  %934 = vmatpush1.bf16.msra.mxu1 %v1610_v13  ;;  %v1639_v30 = vld [vmem:[#allocation8 + $0x1c] ss:$12 sps:$4 sm:$0xff]   ;;  %v1640_v33 = vld [vmem:[#allocation8 + $0x198] ss:$12 sps:$4 sm:$0xff]   ;;  %v1646_v37 = vld [vmem:[#allocation8 + $0x180] ss:$12 sps:$4 sm:$0xff]  }
  0x4c   :  { %894 = vmatprep.subr.bf16.mxu0 %v1615_v14  ;;  %935 = vmatprep.subr.bf16.mxu1 %v1618_v15  ;;  %v1642_v31 = vld [vmem:[#allocation8 + $0x19c] ss:$12 sps:$4 sm:$0xff]   ;;  %v1645_v34 = vld [vmem:[#allocation8 + $0x4] ss:$12 sps:$4 sm:$0xff]   ;;  %v1651_v38 = vld [vmem:[#allocation8 + $0x16c] ss:$12 sps:$4 sm:$0xff]  }
  0x4d   :  { %v1648_v35 = vld [vmem:[#allocation8 + $0x184] ss:$12 sps:$4 sm:$0xff]   ;;  %v1654_v39 = vld [vmem:[#allocation8 + $0x2ec] ss:$12 sps:$4 sm:$0xff]   ;;  %v1649_v40 = vld [vmem:[#allocation8 + $0x168] ss:$12 sps:$4 sm:$0xff]  }
  0x4e   :  { %v1652_v41 = vld [vmem:[#allocation8 + $0x2e8] ss:$12 sps:$4 sm:$0xff]   ;;  %v1655_v43 = vld [vmem:[#allocation8 + $0x150] ss:$12 sps:$4 sm:$0xff]   ;;  %v1661_v48 = vld [vmem:[#allocation8 + $0x138] ss:$12 sps:$4 sm:$0xff]  }
  0x4f   :  { %895 = vmatpush1.bf16.msra.mxu0 %v1613_v16  ;;  %936 = vmatpush1.bf16.msra.mxu1 %v1616_v17  ;;  %v1657_v42 = vld [vmem:[#allocation8 + $0x154] ss:$12 sps:$4 sm:$0xff]   ;;  %v1658_v45 = vld [vmem:[#allocation8 + $0x2d0] ss:$12 sps:$4 sm:$0xff]   ;;  %v1664_v49 = vld [vmem:[#allocation8 + $0x2b8] ss:$12 sps:$4 sm:$0xff]  }
  0x50   :  { %896 = vmatprep.subr.bf16.mxu0 %v1621_v18  ;;  %937 = vmatprep.subr.bf16.mxu1 %v1624_v19  ;;  %v1660_v44 = vld [vmem:[#allocation8 + $0x2d4] ss:$12 sps:$4 sm:$0xff]   ;;  %v1663_v46 = vld [vmem:[#allocation8 + $0x13c] ss:$12 sps:$4 sm:$0xff]   ;;  %v1669_v50 = vld [vmem:[#allocation8 + $0x124] ss:$12 sps:$4 sm:$0xff]  }
  0x51   :  { %v1666_v47 = vld [vmem:[#allocation8 + $0x2bc] ss:$12 sps:$4 sm:$0xff]   ;;  %v1672_v51 = vld [vmem:[#allocation8 + $0x2a4] ss:$12 sps:$4 sm:$0xff]   ;;  %v1667_v52 = vld [vmem:[#allocation8 + $0x120] ss:$12 sps:$4 sm:$0xff]  }
  0x52   :  { %v1670_v53 = vld [vmem:[#allocation8 + $0x2a0] ss:$12 sps:$4 sm:$0xff]   ;;  %v1673_v56 = vld [vmem:[#allocation8 + $0x108] ss:$12 sps:$4 sm:$0xff]   ;;  %v1679_v60 = vld [vmem:[#allocation8 + $0xf0] ss:$12 sps:$4 sm:$0xff]  }
  0x53   :  { %897 = vmatpush1.bf16.msra.mxu0 %v1619_v20  ;;  %938 = vmatpush1.bf16.msra.mxu1 %v1622_v21  ;;  %v1675_v54 = vld [vmem:[#allocation8 + $0x10c] ss:$12 sps:$4 sm:$0xff]   ;;  %v1676_v57 = vld [vmem:[#allocation8 + $0x288] ss:$12 sps:$4 sm:$0xff]   ;;  %v1682_v61 = vld [vmem:[#allocation8 + $0x270] ss:$12 sps:$4 sm:$0xff]  }
  0x54   :  { %898 = vmatprep.subr.bf16.mxu0 %v1627_v22  ;;  %939 = vmatprep.subr.bf16.mxu1 %v1630_v23  ;;  %v1678_v55 = vld [vmem:[#allocation8 + $0x28c] ss:$12 sps:$4 sm:$0xff]   ;;  %v1681_v58 = vld [vmem:[#allocation8 + $0xf4] ss:$12 sps:$4 sm:$0xff]   ;;  %v1687_v62 = vld [vmem:[#allocation8 + $0xdc] ss:$12 sps:$4 sm:$0xff]  }
  0x55   :  { %v1684_v59 = vld [vmem:[#allocation8 + $0x274] ss:$12 sps:$4 sm:$0xff]   ;;  %v1690_v63 = vld [vmem:[#allocation8 + $0x25c] ss:$12 sps:$4 sm:$0xff]   ;;  %v1685_v0 = vld [vmem:[#allocation8 + $0xd8] ss:$12 sps:$4 sm:$0xff]  }
  0x56   :  { %v1688_v1 = vld [vmem:[#allocation8 + $0x258] ss:$12 sps:$4 sm:$0xff]   ;;  %v1691_v4 = vld [vmem:[#allocation8 + $0xc0] ss:$12 sps:$4 sm:$0xff]   ;;  %v1697_v6 = vld [vmem:[#allocation8 + $0x170] ss:$12 sps:$4 sm:$0xff]  }
  0x57   :  { %899 = vmatpush1.bf16.msra.mxu0 %v1625_v24  ;;  %940 = vmatpush1.bf16.msra.mxu1 %v1628_v25  ;;  %v1693_v2 = vld [vmem:[#allocation8 + $0xc4] ss:$12 sps:$4 sm:$0xff]   ;;  %v1694_v5 = vld [vmem:[#allocation8 + $0x240] ss:$12 sps:$4 sm:$0xff]   ;;  %v1953_v9 = vshrl.u32 %v99_v8, 7  ;;  %vm1896_vm1 = vmmov 0  }
  0x58   :  { %900 = vmatprep.subr.bf16.mxu0 %v1633_v26  ;;  %941 = vmatprep.subr.bf16.mxu1 %v1636_v27  ;;  %v1696_v3 = vld [vmem:[#allocation8 + $0x244] ss:$12 sps:$4 sm:$0xff]   ;;  %v97_v12 = vld [vmem:[#allocation7] sm:$0xf]  ;;  %s1897_s30 = smov [#allocation11]  }
  0x59   :  { %v1698_v7 = vld [vmem:[#allocation8 + $0x2f0] ss:$12 sps:$4 sm:$0xff]   ;;  %v101_v10 = vsub.s32 0, %v1953_v9  ;;  %v109_v11 = vsub.s32 2, %v1953_v9  ;;  %v105_v13 = vsub.s32 1, %v1953_v9  ;;  %v113_v14 = vsub.s32 3, %v1953_v9 }
  0x5a   :  { %v1732_v8 = vld [vmem:[#allocation10 + $0x30] sm:$0xff]   ;;  %v1460_v9 = vld [vmem:[%s1994_s6] ss:$0 sm:$0xff]  ;;  %s1347_s8 = sshll.u32 %s1897_s30, 4  ;;  %s1348_s8 = int_to_ptr.vmem [resolvable:$true] %s1347_s8 }
  0x5b   :  { %901 = vmatpush1.bf16.msra.mxu0 %v1631_v28  ;;  %942 = vmatpush1.bf16.msra.mxu1 %v1634_v29  ;;  %v102_v15 = vrot.slane %v97_v12, %v101_v10  ;;  %v110_v16 = vrot.slane %v97_v12, %v109_v11  ;;  %v106_v17 = vrot.slane %v97_v12, %v105_v13  ;;  %s1855_s9 = scalar_lea.vmem %s1348_s8, 64  ;;  %p1860_p12 = scmp.lt.s32.totalorder %s1348_s8, %s1348_s8 }
  0x5c   :  { %902 = vmatprep.subr.bf16.mxu0 %v1639_v30  ;;  %943 = vmatprep.subr.bf16.mxu1 %v1642_v31  ;;  %v114_v18 = vrot.slane %v97_v12, %v113_v14  ;;  %v1733_v12 = vld [vmem:[#allocation10 + $0x68] sm:$0xff]   ;;  %p1856_p11 = scmp.ne.s32.totalorder %s1348_s8, %s1855_s9  ;;  %p1861_p13 = scmp.lt.s32.totalorder %s1855_s9, %s1855_s9 }
  0x5d   :  { %v1734_v14 = vld [vmem:[#allocation10 + $0x28] sm:$0xff]  }
  0x5e   :  { %p1862_p0 = por %p1861_p13, %p1860_p12 }
  0x5f   :  { %903 = vmatpush1.bf16.msra.mxu0 %v1637_v32  ;;  %944 = vmatpush1.bf16.msra.mxu1 %v1640_v33 }
  0x60   :  { %904 = vmatprep.subr.bf16.mxu0 %v1645_v34  ;;  %945 = vmatprep.subr.bf16.mxu1 %v1648_v35  ;;  %p1863_p1 = pnand %p1862_p0, %p1856_p11 }
  0x63   :  { %905 = vmatpush1.bf16.msra.mxu0 %v1643_v36  ;;  %946 = vmatpush1.bf16.msra.mxu1 %v1646_v37 }
  0x64   :  { %906 = vmatprep.subr.bf16.mxu0 %v1651_v38  ;;  %947 = vmatprep.subr.bf16.mxu1 %v1654_v39  ;;  %v1699_v38 = vld [vmem:[#allocation8 + $0xb0] ss:$12 sps:$4 sm:$0xff]  }
  0x65   :  { %v1700_v39 = vld [vmem:[#allocation8 + $0x230] ss:$12 sps:$4 sm:$0xff]  }
  0x67   :  { %907 = vmatpush2.bf16.msra.mxu0 %v1649_v40  ;;  %948 = vmatpush2.bf16.msra.mxu1 %v1652_v41  ;;  %v1701_v41 = vld [vmem:[#allocation8 + $0x158] ss:$12 sps:$4 sm:$0xff]  }
  0x68   :  { %908 = vmatprep.subr.bf16.mxu0 %v1657_v42  ;;  %949 = vmatprep.subr.bf16.mxu1 %v1660_v44  ;;  %v1702_v42 = vld [vmem:[#allocation8 + $0x2d8] ss:$12 sps:$4 sm:$0xff]  }
  0x69   :  { %v1704_v44 = vld [vmem:[#allocation8 + $0x218] ss:$12 sps:$4 sm:$0xff]  }
  0x6b   :  { %909 = vmatpush2.bf16.msra.mxu0 %v1655_v43  ;;  %950 = vmatpush2.bf16.msra.mxu1 %v1658_v45  ;;  %v1703_v43 = vld [vmem:[#allocation8 + $0x98] ss:$12 sps:$4 sm:$0xff]   ;;  %v1705_v45 = vld [vmem:[#allocation8 + $0x140] ss:$12 sps:$4 sm:$0xff]  }
  0x6c   :  { %910 = vmatprep.subr.bf16.mxu0 %v1663_v46  ;;  %951 = vmatprep.subr.bf16.mxu1 %v1666_v47  ;;  %v1706_v46 = vld [vmem:[#allocation8 + $0x2c0] ss:$12 sps:$4 sm:$0xff]  }
  0x6d   :  { %v1707_v47 = vld [vmem:[#allocation8 + $0x80] ss:$12 sps:$4 sm:$0xff]  }
  0x6f   :  { %911 = vmatpush2.bf16.msra.mxu0 %v1661_v48  ;;  %952 = vmatpush2.bf16.msra.mxu1 %v1664_v49  ;;  %v1708_v48 = vld [vmem:[#allocation8 + $0x200] ss:$12 sps:$4 sm:$0xff]   ;;  %v1709_v49 = vld [vmem:[#allocation8 + $0x128] ss:$12 sps:$4 sm:$0xff]  }
  0x70   :  { %912 = vmatprep.subr.bf16.mxu0 %v1669_v50  ;;  %953 = vmatprep.subr.bf16.mxu1 %v1672_v51  ;;  %v1710_v50 = vld [vmem:[#allocation8 + $0x2a8] ss:$12 sps:$4 sm:$0xff]  }
  0x71   :  { %v1711_v51 = vld [vmem:[#allocation8 + $0x68] ss:$12 sps:$4 sm:$0xff]  }
  0x73   :  { %913 = vmatpush2.bf16.msra.mxu0 %v1667_v52  ;;  %954 = vmatpush2.bf16.msra.mxu1 %v1670_v53  ;;  %v1712_v52 = vld [vmem:[#allocation8 + $0x1e8] ss:$12 sps:$4 sm:$0xff]   ;;  %v1713_v53 = vld [vmem:[#allocation8 + $0x110] ss:$12 sps:$4 sm:$0xff]  }
  0x74   :  { %914 = vmatprep.subr.bf16.mxu0 %v1675_v54  ;;  %955 = vmatprep.subr.bf16.mxu1 %v1678_v55  ;;  %v1714_v54 = vld [vmem:[#allocation8 + $0x290] ss:$12 sps:$4 sm:$0xff]  }
  0x75   :  { %v1715_v55 = vld [vmem:[#allocation8 + $0x50] ss:$12 sps:$4 sm:$0xff]  }
  0x77   :  { %915 = vmatpush2.bf16.msra.mxu0 %v1673_v56  ;;  %956 = vmatpush2.bf16.msra.mxu1 %v1676_v57  ;;  %v1716_v56 = vld [vmem:[#allocation8 + $0x1d0] ss:$12 sps:$4 sm:$0xff]   ;;  %v1717_v57 = vld [vmem:[#allocation8 + $0xf8] ss:$12 sps:$4 sm:$0xff]  }
  0x78   :  { %916 = vmatprep.subr.bf16.mxu0 %v1681_v58  ;;  %957 = vmatprep.subr.bf16.mxu1 %v1684_v59  ;;  %v1718_v58 = vld [vmem:[#allocation8 + $0x278] ss:$12 sps:$4 sm:$0xff]  }
  0x79   :  { %v1719_v59 = vld [vmem:[#allocation8 + $0x38] ss:$12 sps:$4 sm:$0xff]  }
  0x7b   :  { %917 = vmatpush2.bf16.msra.mxu0 %v1679_v60  ;;  %958 = vmatpush2.bf16.msra.mxu1 %v1682_v61  ;;  %v1720_v60 = vld [vmem:[#allocation8 + $0x1b8] ss:$12 sps:$4 sm:$0xff]   ;;  %v1721_v61 = vld [vmem:[#allocation8 + $0xe0] ss:$12 sps:$4 sm:$0xff]  }
  0x7c   :  { %918 = vmatprep.subr.bf16.mxu0 %v1687_v62  ;;  %959 = vmatprep.subr.bf16.mxu1 %v1690_v63  ;;  %v1722_v62 = vld [vmem:[#allocation8 + $0x260] ss:$12 sps:$4 sm:$0xff]  }
  0x7d   :  { %v1723_v63 = vld [vmem:[#allocation8 + $0x20] ss:$12 sps:$4 sm:$0xff]  }
  0x7f   :  { %919 = vmatpush2.bf16.msra.mxu0 %v1685_v0  ;;  %960 = vmatpush2.bf16.msra.mxu1 %v1688_v1  ;;  %v1724_v0 = vld [vmem:[#allocation8 + $0x1a0] ss:$12 sps:$4 sm:$0xff]   ;;  %v1725_v1 = vld [vmem:[#allocation8 + $0xc8] ss:$12 sps:$4 sm:$0xff]  }
  0x80   :  { %920 = vmatprep.subr.bf16.mxu0 %v1693_v2  ;;  %961 = vmatprep.subr.bf16.mxu1 %v1696_v3  ;;  %v1726_v2 = vld [vmem:[#allocation8 + $0x248] ss:$12 sps:$4 sm:$0xff]  }
  0x81   :  { %v1727_v3 = vld [vmem:[#allocation8 + $0x8] ss:$12 sps:$4 sm:$0xff]  }
  0x83   :  { %921 = vmatpush2.bf16.msra.mxu0 %v1691_v4  ;;  %962 = vmatpush2.bf16.msra.mxu1 %v1694_v5  ;;  %v1728_v4 = vld [vmem:[#allocation8 + $0x188] ss:$12 sps:$4 sm:$0xff]   ;;  %v1729_v5 = vld [vmem:[#allocation10 + $0x78] sm:$0xff]  }
  0x84   :  { %1485 = vmatprep.subr.bf16.mxu0 %v1697_v6  ;;  %1507 = vmatprep.subr.bf16.mxu1 %v1698_v7  ;;  %v1730_v6 = vld [vmem:[#allocation10 + $0x38] sm:$0xff]   ;;  %v1731_v7 = vld [vmem:[#allocation10 + $0x70] sm:$0xff]  }
 0x106   :  { %v177_v19 = vpop.f32.mrf.mxu0  ;;  %v218_v20 = vpop.f32.mrf.mxu1 }
 0x107   :  { %v178_v21 = vadd.f32 %v177_v19, %v102_v15  ;;  %v219_v22 = vadd.f32 %v218_v20, %v110_v16  ;;  %v1735_v15 = vld [vmem:[#allocation10 + $0x60] sm:$0xff]   ;;  %v1739_v19 = vld [vmem:[#allocation10 + $0x50] sm:$0xff]  }
 0x108   :  { %v179_v23 = vpop.f32.mrf.mxu0  ;;  %v220_v24 = vpop.f32.mrf.mxu1  ;;  %v1736_v16 = vld [vmem:[#allocation10 + $0x20] sm:$0xff]   ;;  %v1740_v20 = vld [vmem:[#allocation10 + $0x10] sm:$0xff]  }
 0x109   :  { %v227_v25 = vmax.f32 %v219_v22, 0.0  ;;  %v180_v26 = vadd.f32 %v179_v23, %v106_v17  ;;  %v221_v27 = vadd.f32 %v220_v24, %v114_v18  ;;  %v225_v28 = vmax.f32 %v178_v21, 0.0  ;;  %v1737_v17 = vld [vmem:[#allocation10 + $0x58] sm:$0xff]   ;;  %v1741_v21 = vld [vmem:[#allocation10 + $0x48] sm:$0xff]   ;;  %v1743_v23 = vld [vmem:[#allocation10 + $0x40] sm:$0xff]  }
 0x10a   :  { %v181_v29 = vpop.f32.mrf.mxu0  ;;  %v222_v30 = vpop.f32.mrf.mxu1  ;;  %v1738_v18 = vld [vmem:[#allocation10 + $0x18] sm:$0xff]   ;;  %v1742_v22 = vld [vmem:[#allocation10 + $0x8] sm:$0xff]   ;;  %v1744_v24 = vld [vmem:[#allocation10] sm:$0xff]  }
 0x10b   :  { %v226_v31 = vmax.f32 %v180_v26, 0.0  ;;  %v228_v32 = vmax.f32 %v221_v27, 0.0  ;;  %v1965_v33 = vpack.c.bf16 %v227_v25, %v227_v25  ;;  %v1967_v40 = vpack.c.bf16 %v225_v28, %v225_v28  ;;  %v1745_v25 = vld [vmem:[#allocation10 + $0xb8] sm:$0xff]   ;;  %v1746_v27 = vld [vmem:[#allocation10 + $0xb0] sm:$0xff]   ;;  %v1747_v28 = vld [vmem:[#allocation10 + $0xa8] sm:$0xff]  }
 0x10c   :  { %v182_v34 = vpop.f32.mrf.mxu0  ;;  %v223_v35 = vpop.f32.mrf.mxu1  ;;  %v1895_v26 = vmov 0.0   ;;  %v1748_v29 = vld [vmem:[#allocation10 + $0xa0] sm:$0xff]   ;;  %v1749_v30 = vld [vmem:[#allocation10 + $0x98] sm:$0xff]  }
 0x10d   :  { %v230_v36 = vpack.c.bf16 %v226_v31, %v226_v31  ;;  %v232_v37 = vpack.c.bf16 %v228_v32, %v228_v32  ;;  %v1750_v31 = vld [vmem:[#allocation10 + $0x90] sm:$0xff]   ;;  %v1751_v32 = vld [vmem:[#allocation10 + $0x88] sm:$0xff]   ;;  %v361_v34 = vld [vmem:[%s1992_s4] sm:$0x7] }
 0x10e   :  { %v366_v35 = vrot.slane %v361_v34, %v101_v10 }
 0x10f   :  { %922 = vmatprep.mubr.bf16.mxu0 %v230_v36  ;;  %963 = vmatprep.mubr.bf16.mxu1 %v232_v37 }
 0x110   :  { %923 = vmatmul.mubr.bf16.vlgmr.msra.gmra.mxu0 %v1967_v40  ;;  %964 = vmatmul.mubr.bf16.vlgmr.msra.gmra.mxu1 %v1965_v33 }
 0x111   :  { %1486 = vmatpush3.bf16.msra.mxu0 %v1699_v38  ;;  %1508 = vmatpush3.bf16.msra.mxu1 %v1700_v39 }
 0x112   :  { %1004 = vmatprep.mubr.bf16.mxu0 %v230_v36  ;;  %1044 = vmatprep.mubr.bf16.mxu1 %v232_v37  ;;  %v370_v36 = vrot.slane %v361_v34, %v105_v13 }
 0x113   :  { %1487 = vmatprep.subr.bf16.mxu0 %v1701_v41  ;;  %1509 = vmatprep.subr.bf16.mxu1 %v1702_v42 }
 0x115   :  { %1488 = vmatpush3.bf16.msra.mxu0 %v1703_v43  ;;  %1510 = vmatpush3.bf16.msra.mxu1 %v1704_v44 }
 0x116   :  { %1489 = vmatprep.subr.bf16.mxu0 %v1705_v45  ;;  %1511 = vmatprep.subr.bf16.mxu1 %v1706_v46 }
 0x119   :  { %1490 = vmatpush3.bf16.msra.mxu0 %v1707_v47  ;;  %1512 = vmatpush3.bf16.msra.mxu1 %v1708_v48 }
 0x11a   :  { %1491 = vmatprep.subr.bf16.mxu0 %v1709_v49  ;;  %1513 = vmatprep.subr.bf16.mxu1 %v1710_v50 }
 0x11d   :  { %1492 = vmatpush3.bf16.msra.mxu0 %v1711_v51  ;;  %1514 = vmatpush3.bf16.msra.mxu1 %v1712_v52 }
 0x11e   :  { %1493 = vmatprep.subr.bf16.mxu0 %v1713_v53  ;;  %1515 = vmatprep.subr.bf16.mxu1 %v1714_v54  ;;  %v374_v53 = vrot.slane %v361_v34, %v109_v11 }
 0x121   :  { %1494 = vmatpush3.bf16.msra.mxu0 %v1715_v55  ;;  %1516 = vmatpush3.bf16.msra.mxu1 %v1716_v56 }
 0x122   :  { %1495 = vmatprep.subr.bf16.mxu0 %v1717_v57  ;;  %1517 = vmatprep.subr.bf16.mxu1 %v1718_v58 }
 0x125   :  { %1496 = vmatpush3.bf16.msra.mxu0 %v1719_v59  ;;  %1518 = vmatpush3.bf16.msra.mxu1 %v1720_v60 }
 0x126   :  { %1497 = vmatprep.subr.bf16.mxu0 %v1721_v61  ;;  %1519 = vmatprep.subr.bf16.mxu1 %v1722_v62 }
 0x129   :  { %1498 = vmatpush3.bf16.msra.mxu0 %v1723_v63  ;;  %1520 = vmatpush3.bf16.msra.mxu1 %v1724_v0 }
 0x12a   :  { %1499 = vmatprep.subr.bf16.mxu0 %v1725_v1  ;;  %1521 = vmatprep.subr.bf16.mxu1 %v1726_v2 }
 0x12d   :  { %1500 = vmatpush3.bf16.msra.mxu0 %v1727_v3  ;;  %1522 = vmatpush3.bf16.msra.mxu1 %v1728_v4 }
 0x12e   :  { %1529 = vmatprep.subr.bf16.mxu0 %v1729_v5  ;;  %1560 = vmatprep.subr.bf16.mxu1 %v1895_v26 }
 0x130   :  { %1005 = vmatmul.mubr.bf16.vlgmr.msra.gmra.mxu0 %v1967_v40  ;;  %1045 = vmatmul.mubr.bf16.vlgmr.msra.gmra.mxu1 %v1965_v33  ;;  %v1752_v33 = vld [vmem:[#allocation10 + $0x80] sm:$0xff]  }
 0x131   :  { %1530 = vmatpush3.bf16.msra.mxu0 %v1730_v6  ;;  %1561 = vmatpush3.bf16.msra.mxu1 %v1745_v25 }
 0x132   :  { %1531 = vmatprep.subr.bf16.mxu0 %v1731_v7  ;;  %1562 = vmatprep.subr.bf16.mxu1 %v1895_v26 }
 0x133   :  { %1576 = vmatprep.mubr.msk.bf16.mxu1 %vm1896_vm1, %v1895_v26 }
 0x135   :  { %1532 = vmatpush3.bf16.msra.mxu0 %v1732_v8  ;;  %1563 = vmatpush3.bf16.msra.mxu1 %v1746_v27 }
 0x136   :  { %1533 = vmatprep.subr.bf16.mxu0 %v1733_v12  ;;  %1564 = vmatprep.subr.bf16.mxu1 %v1895_v26 }
 0x139   :  { %1534 = vmatpush3.bf16.msra.mxu0 %v1734_v14  ;;  %1565 = vmatpush3.bf16.msra.mxu1 %v1747_v28 }
 0x13a   :  { %1535 = vmatprep.subr.bf16.mxu0 %v1735_v15  ;;  %1566 = vmatprep.subr.bf16.mxu1 %v1895_v26 }
 0x13d   :  { %1536 = vmatpush3.bf16.msra.mxu0 %v1736_v16  ;;  %1567 = vmatpush3.bf16.msra.mxu1 %v1748_v29 }
 0x13e   :  { %1537 = vmatprep.subr.bf16.mxu0 %v1737_v17  ;;  %1568 = vmatprep.subr.bf16.mxu1 %v1895_v26 }
 0x141   :  { %1538 = vmatpush3.bf16.msra.mxu0 %v1738_v18  ;;  %1569 = vmatpush3.bf16.msra.mxu1 %v1749_v30 }
 0x142   :  { %1539 = vmatprep.subr.bf16.mxu0 %v1739_v19  ;;  %1570 = vmatprep.subr.bf16.mxu1 %v1895_v26 }
 0x145   :  { %1540 = vmatpush3.bf16.msra.mxu0 %v1740_v20  ;;  %1571 = vmatpush3.bf16.msra.mxu1 %v1750_v31 }
 0x146   :  { %1541 = vmatprep.subr.bf16.mxu0 %v1741_v21  ;;  %1572 = vmatprep.subr.bf16.mxu1 %v1895_v26 }
 0x149   :  { %1542 = vmatpush3.bf16.msra.mxu0 %v1742_v22  ;;  %1573 = vmatpush3.bf16.msra.mxu1 %v1751_v32 }
 0x14a   :  { %1543 = vmatprep.subr.bf16.mxu0 %v1743_v23  ;;  %1574 = vmatprep.subr.bf16.mxu1 %v1895_v26 }
 0x14d   :  { %1544 = vmatpush3.bf16.msra.mxu0 %v1744_v24  ;;  %1575 = vmatpush3.bf16.msra.mxu1 %v1752_v33 }
 0x1d0   :  { %v924_v37 = vpop.f32.mrf.mxu0  ;;  %v965_v38 = vpop.f32.mrf.mxu1 }
 0x1d1   :  { %v925_v39 = vadd.f32 %v924_v37, %v366_v35 }
 0x1d2   :  { %v926_v40 = vpop.f32.mrf.mxu0  ;;  %v967_v41 = vpop.f32.mrf.mxu1 }
 0x1d3   :  { %v966_v42 = vadd.f32 %v965_v38, %v925_v39  ;;  %v927_v43 = vadd.f32 %v926_v40, %v370_v36 }
 0x1d4   :  { %v928_v44 = vpop.f32.mrf.mxu0  ;;  %v969_v45 = vpop.f32.mrf.mxu1 }
 0x1d5   :  { %v968_v46 = vadd.f32 %v967_v41, %v927_v43  ;;  %v1052_v47 = vmax.f32 %v966_v42, 0.0 }
 0x1d6   :  { %v929_v48 = vpop.f32.mrf.mxu0  ;;  %v970_v49 = vpop.f32.mrf.mxu1 }
 0x1d7   :  { %v1053_v50 = vmax.f32 %v968_v46, 0.0  ;;  %v1055_v52 = vpack.c.bf16 %v1052_v47, %v1052_v47 }
 0x1d9   :  { %v1056_v51 = vpack.c.bf16 %v1053_v50, %v1053_v50 }
 0x1db   :  { %1289 = vmatprep.mubr.bf16.mxu0 %v1056_v51 }
 0x1dc   :  { %1290 = vmatmul.mubr.bf16.vlgmr.msra.gmra.mxu0 %v1055_v52 }
 0x1f0   :  { %v1501_v10 = vpop.f32.mrf.mxu0  ;;  %v1523_v13 = vpop.f32.mrf.mxu1 }
 0x1f2   :  { %v1502_v54 = vpop.f32.mrf.mxu0  ;;  %v1524_v55 = vpop.f32.mrf.mxu1 }
 0x1f3   :  { %v1503_v56 = vadd.f32 %v1502_v54, %v1501_v10  ;;  %v1525_v60 = vadd.f32 %v1524_v55, %v1523_v13 }
 0x1f4   :  { %v1504_v57 = vpop.f32.mrf.mxu0  ;;  %v1526_v58 = vpop.f32.mrf.mxu1 }
 0x1f5   :  { %v1007_v59 = vadd.f32 %v1503_v56, %v374_v53 }
 0x1f6   :  { %v1505_v61 = vpop.f32.mrf.mxu0  ;;  %v1527_v62 = vpop.f32.mrf.mxu1 }
 0x1f7   :  { %v1047_v63 = vadd.f32 %v1525_v60, %v1007_v59 }
 0x1f9   :  { %v1054_v0 = vmax.f32 %v1047_v63, 0.0 }
 0x1fb   :  { %v1057_v1 = vpack.c.bf16 %v1054_v0, %v1054_v0 }
 0x1fd   :  { %1577 = vmatmul.mubr.bf16.vlgmr.msra.gmra.mxu1 %v1057_v1 }
 0x29c   :  { %v1545_v2 = vpop.f32.mrf.mxu0 }
 0x29e   :  { %v1546_v3 = vpop.f32.mrf.mxu0 }
 0x29f   :  { %v1547_v6 = vadd.f32 %v1546_v3, %v1545_v2 }
 0x2a0   :  { %v1548_v4 = vpop.f32.mrf.mxu0 }
 0x2a1   :  { %v1292_v11 = vadd.f32 %v1547_v6, %v1460_v9 }
 0x2a2   :  { %v1549_v5 = vpop.f32.mrf.mxu0 }
 0x2bd   :  { %v1331_v7 = vpop.f32.mrf.mxu1 }
 0x2be   :  { %v1332_v8 = vadd.f32 %v1331_v7, %v1292_v11 }
 0x2bf   :  { %v1578_v12 = vpop.f32.mrf.mxu1 }
 0x2c0   :  { %1753 = vtanh.f32 %v1332_v8 }
 0x2c1   :  { %v1334_v14 = vpop.f32.mrf.mxu1 }
 0x2c3   :  { %v1579_v15 = vpop.f32.mrf.mxu1 }
 0x2cd   :  { %v1754_v16 = vpop.eup %1753 }
 0x2ce   :  { %v1338_v17 = vmul.f32 2.0, %v1754_v16 }
 0x2d0   :  { %v1339_v18 = vpack.c.bf16 %v1338_v17, %v1338_v17 }
 0x2d2   :  { %1340 = vst [vmem:[#allocation11] sm:$0xf] %v1339_v18 }
 0x2d3   :  { %1866 = shalt.err (!%p1863_p1)
}
 0x2d4   :  { %1350 = dma.vmem_to_hbm [thread:$0]  %s1348_s8, 64, %s1995_s7, [#allocation4]  }
 0x2d5   :  { %1881 = dma.done.wait [#allocation4], 64  }
 0x2d6   :  { %1882 = vsyncadd [#allocation4], 4294967232 }
 0x2d7   :  { %1354 = vsyncpa [#allocation3], 1 }
 0x2d8   :  { %1355 = vsyncpa [#allocation6], 1 }
 0x2d9   :  { %1356 = vsyncpa [#allocation9], 1 }
 0x2da   :  { %1357 = vsyncpa [#allocation4], 1 }

</bundles_post_ra>
